<compile_context>
chip_gen: v7x
topology: tpu7x:2x2x1
jax: 0.10.0
libtpu: 0.0.40
codegen_flags: <defaults>
</compile_context>

<pallas_src>
import functools

import jax
import jax.numpy as jnp
import numpy as np
from jax.experimental import pallas as pl
from jax.experimental.pallas import tpu as pltpu

FP8_MAX = {
    jnp.float8_e4m3fn: 448.0,
    jnp.float8_e5m2: 57344.0,
}


def _pick_tile(dim, candidates):
    for c in candidates:
        if dim % c == 0:
            return c
    return dim


def _pick_tk(K, block_size):
    # tk/B must be a multiple of 8 (sublane constraint on the (tk/B, tn) weight-scale block)
    # unless tk == K (then that block spans the full K/B extent).
    for cand in (2048, 1024):
        if cand < K and K % cand == 0 and (cand // block_size) % 8 == 0:
            return cand
    return K


# -----------------------------------------------------------------------------------------
# Pass 1: blockwise fp8 activation quantization (hoisted out of the GEMM per perf review).
# -----------------------------------------------------------------------------------------
def _act_quant_kernel(x_ref, xq_ref, xs_ref, *, block_size, fp8_max, fp8_dtype, num_blocks):
    B = block_size
    for kb in range(num_blocks):
        xb = x_ref[:, kb * B:(kb + 1) * B].astype(jnp.float32)       # (tm, B)
        amax = jnp.max(jnp.abs(xb), axis=-1, keepdims=True)           # (tm, 1)
        s = amax / fp8_max                                            # exact reference formula
        # NOTE: like the torchao reference, an all-zero block gives s == 0 -> inf/nan (no clamp).
        xq_ref[:, kb * B:(kb + 1) * B] = (xb / s).astype(fp8_dtype)
        xs_ref[:, kb:kb + 1] = s


def fp8_blockwise_act_quant(x, block_size=128, fp8_dtype=jnp.float8_e4m3fn, *, tm=None):
    """x: (M, K) bf16/f32 -> (x_q (M, K) fp8, x_s (M, K // block_size) f32)."""
    M, K = x.shape
    assert block_size % 128 == 0 and K % block_size == 0
    KB = K // block_size
    if tm is None:
        tm = _pick_tile(M, (256, 128, 64, 32, 16, 8))
    assert M % tm == 0 and (tm % 8 == 0 or tm == M)

    kernel = functools.partial(
        _act_quant_kernel, block_size=block_size, fp8_max=FP8_MAX[fp8_dtype],
        fp8_dtype=fp8_dtype, num_blocks=KB)

    # TODO(synk): for very large K also tile the K axis here; full-K rows are fine at these sizes.
    return pl.pallas_call(
        kernel,
        out_shape=(jax.ShapeDtypeStruct((M, K), fp8_dtype),
                   jax.ShapeDtypeStruct((M, KB), jnp.float32)),
        grid_spec=pltpu.PrefetchScalarGridSpec(
            num_scalar_prefetch=0,
            grid=(M // tm,),
            in_specs=[pl.BlockSpec((tm, K), lambda i: (i, 0))],
            out_specs=(pl.BlockSpec((tm, K), lambda i: (i, 0)),
                       pl.BlockSpec((tm, KB), lambda i: (i, 0))),
        ),
        compiler_params=pltpu.CompilerParams(
            dimension_semantics=("parallel",),
            vmem_limit_bytes=32 * 1024 * 1024,
        ),
    )(x)


# -----------------------------------------------------------------------------------------
# One-time weight relayout (do this at weight-load time, not per forward call).
# -----------------------------------------------------------------------------------------
def prepare_blockwise_weights(weight_q, weight_scale, block_size=128):
    """weight_q: (N, K) fp8 (torch.nn.Linear layout), weight_scale: (N/B, K/B) f32.

    Returns w_t (K, N) fp8 (contraction-major for the MXU) and ws_cols (K/B, N) f32
    per-output-column scales.  ws_cols is ~B x smaller than the weights, so the one-time
    expansion costs ~1% of weight bytes and removes all per-step scale relayout work.
    """
    w_t = weight_q.T                                                             # (K, N) fp8
    ws_cols = jnp.repeat(weight_scale.astype(jnp.float32).T, block_size, axis=1)  # (K/B, N) f32
    return w_t, ws_cols


# -----------------------------------------------------------------------------------------
# Pass 2: blockwise-scaled fp8 GEMM.
# -----------------------------------------------------------------------------------------
def _bq_gemm_kernel(xq_ref, xs_ref, w_ref, ws_ref, *rest, block_size, k_subblocks,
                    num_k_steps, mxu_dtype, has_bias, fold_scales):
    """xq_ref : (tm, tk)     fp8 activations
       xs_ref : (1, tm, c)   f32 per-row activation scales for this k slab (c = tk/B)
       w_ref  : (tk, tn)     fp8 weights (pre-transposed to (K, N))
       ws_ref : (c, tn)      f32 per-output-column weight scales for this k slab
       bias   : (1, tn)      optional f32 bias
       o_ref  : (tm, tn)     output
       acc_ref: (tm, tn)     f32 VMEM accumulator
    """
    if has_bias:
        bias_ref, o_ref, acc_ref = rest
    else:
        bias_ref = None
        o_ref, acc_ref = rest

    k = pl.program_id(2)
    B = block_size
    c = k_subblocks

    @pl.when(k == 0)
    def _init():
        acc_ref[...] = jnp.zeros_like(acc_ref)

    if fold_scales:
        # bf16 path (v5e/v6e/v7x): fold the blockwise scales into the MXU operands and contract
        # the whole tk = c*B depth with a single dot -> one accumulator RMW per grid step and a
        # full 256-deep MXU fill.  (Adds <=2^-9 relative rounding per operand.)
        x_chunks, w_chunks = [], []
        for kb in range(c):
            xs_col = xs_ref[0, :, kb:kb + 1]                              # (tm, 1) f32, static
            xf = xq_ref[:, kb * B:(kb + 1) * B].astype(jnp.float32)       # fp8 -> f32 (exact)
            x_chunks.append((xf * xs_col).astype(mxu_dtype))
            ws_row = ws_ref[kb:kb + 1, :]                                 # (1, tn) f32, static
            wf = w_ref[kb * B:(kb + 1) * B, :].astype(jnp.float32)
            w_chunks.append((wf * ws_row).astype(mxu_dtype))
        x_op = x_chunks[0] if c == 1 else jnp.concatenate(x_chunks, axis=1)   # (tm, tk)
        w_op = w_chunks[0] if c == 1 else jnp.concatenate(w_chunks, axis=0)   # (tk, tn)
        acc_ref[...] += jnp.dot(x_op, w_op, preferred_element_type=jnp.float32)
    else:
        # v7x native fp8-MXU path: operands stay fp8; blockwise scales applied in fp32 epilogue.
        for kb in range(c):
            xs_col = xs_ref[0, :, kb:kb + 1]
            ws_row = ws_ref[kb:kb + 1, :]
            part = jnp.dot(xq_ref[:, kb * B:(kb + 1) * B].astype(mxu_dtype),
                           w_ref[kb * B:(kb + 1) * B, :].astype(mxu_dtype),
                           preferred_element_type=jnp.float32)
            acc_ref[...] += part * (xs_col * ws_row)

    @pl.when(k == num_k_steps - 1)
    def _finish():
        out = acc_ref[...]
        if has_bias:
            out = out + bias_ref[...].astype(jnp.float32)
        o_ref[...] = out.astype(o_ref.dtype)


def blockwise_fp8_gemm(x_q, x_s, w_t, ws_cols, bias=None, *, block_size=128,
                       mxu_dtype=jnp.bfloat16, out_dtype=jnp.float32,
                       tm=None, tn=None, tk=None):
    M, K = x_q.shape
    K2, N = w_t.shape
    assert K == K2 and K % block_size == 0 and N % block_size == 0
    KB = K // block_size
    assert x_s.shape == (M, KB) and ws_cols.shape == (KB, N)

    if tm is None:
        tm = _pick_tile(M, (256, 128, 64, 32, 16, 8))     # cap keeps VMEM budget + megacore i axis
    if tn is None:
        tn = _pick_tile(N, (512, 256, 128))                # lane-dense output stores
    if tk is None:
        tk = _pick_tk(K, block_size)
    assert M % tm == 0 and N % tn == 0 and K % tk == 0
    assert (tm % 8 == 0 or tm == M) and tn % 128 == 0 and tk % block_size == 0
    c = tk // block_size
    nk = K // tk
    assert c % 8 == 0 or tk == K, "tk/block_size must be a multiple of 8 (or tk == K)"

    # Per-k-step layout of the activation scales: (nk, M, c) so every in-kernel read is static.
    x_s_r = jnp.transpose(x_s.reshape(M, nk, c), (1, 0, 2))

    has_bias = bias is not None
    fold_scales = np.dtype(mxu_dtype).itemsize > 1        # fp8 MXU path keeps scales in epilogue

    kernel = functools.partial(
        _bq_gemm_kernel, block_size=block_size, k_subblocks=c, num_k_steps=nk,
        mxu_dtype=mxu_dtype, has_bias=has_bias, fold_scales=fold_scales)

    in_specs = [
        pl.BlockSpec((tm, tk), lambda i, j, k: (i, k)),       # x_q (fp8)
        pl.BlockSpec((1, tm, c), lambda i, j, k: (k, i, 0)),  # x_s rows for this k slab
        pl.BlockSpec((tk, tn), lambda i, j, k: (k, j)),       # w^T (fp8)
        pl.BlockSpec((c, tn), lambda i, j, k: (k, j)),        # per-column weight scales
    ]
    inputs = [x_q, x_s_r, w_t, ws_cols]
    if has_bias:
        in_specs.append(pl.BlockSpec((1, tn), lambda i, j, k: (0, j)))
        inputs.append(jnp.asarray(bias, jnp.float32).reshape(1, N))

    cost = pl.CostEstimate(
        flops=2 * M * N * K,
        transcendentals=0,
        bytes_accessed=M * K + K * N + 4 * M * N + 4 * KB * N + 4 * M * KB,
    )

    return pl.pallas_call(
        kernel,
        out_shape=jax.ShapeDtypeStruct((M, N), out_dtype),
        grid_spec=pltpu.PrefetchScalarGridSpec(
            num_scalar_prefetch=0,
            grid=(M // tm, N // tn, nk),
            in_specs=in_specs,
            out_specs=pl.BlockSpec((tm, tn), lambda i, j, k: (i, j)),
            scratch_shapes=[pltpu.VMEM((tm, tn), jnp.float32)],
        ),
        compiler_params=pltpu.CompilerParams(
            dimension_semantics=("parallel", "parallel", "arbitrary"),
            vmem_limit_bytes=32 * 1024 * 1024,   # explicit; also raises the v5e 16 MiB default
        ),
        cost_estimate=cost,
    )(*inputs)


def blockwise_quant_linear(x, w_t, ws_cols, bias=None, *, block_size=128,
                           fp8_dtype=jnp.float8_e4m3fn, mxu_dtype=jnp.bfloat16,
                           out_dtype=jnp.float32, tm=None, tn=None, tk=None):
    """BlockwiseQuantLinear.forward: x (M, K) -> (M, N).  Weights come pre-relayouted from
    prepare_blockwise_weights (one-time, weight-load cost).  out_dtype=jnp.bfloat16 halves the
    output writeback; mxu_dtype=fp8_dtype selects the v7x native fp8-MXU path."""
    x_q, x_s = fp8_blockwise_act_quant(x, block_size, fp8_dtype)
    return blockwise_fp8_gemm(x_q, x_s, w_t, ws_cols, bias, block_size=block_size,
                              mxu_dtype=mxu_dtype, out_dtype=out_dtype, tm=tm, tn=tn, tk=tk)


# -----------------------------------------------------------------------------------------
# Pure-JAX reference of the torchao forward semantics (for testing only).
# -----------------------------------------------------------------------------------------
def reference_forward(x, weight_q, weight_scale, bias, block_size, fp8_dtype):
    fp8_max = FP8_MAX[fp8_dtype]
    M, K = x.shape
    xf = x.astype(jnp.float32).reshape(M, K // block_size, block_size)
    s = jnp.max(jnp.abs(xf), axis=-1, keepdims=True) / fp8_max
    x_deq = ((xf / s).astype(fp8_dtype).astype(jnp.float32) * s).reshape(M, K)
    w_s_full = jnp.repeat(jnp.repeat(weight_scale.astype(jnp.float32), block_size, axis=0),
                          block_size, axis=1)
    w_deq = weight_q.astype(jnp.float32) * w_s_full
    y = jnp.dot(x_deq, w_deq.T, precision=jax.lax.Precision.HIGHEST)
    if bias is not None:
        y = y + bias[None, :].astype(jnp.float32)
    return y


if __name__ == "__main__":
    # Module config: in_features=2048, out_features=1024, block_size=128,
    # dtype=float8_e4m3fn, bias=False (module default).  M = 64 flattened tokens.
    in_features, out_features, block_size = 2048, 1024, 128
    fp8_dtype = jnp.float8_e4m3fn
    M = 64

    key = jax.random.PRNGKey(0)
    k_x, k_w, k_s = jax.random.split(key, 3)

    weight_q = (jax.random.normal(k_w, (out_features, in_features), jnp.float32) * 0.5
                ).astype(fp8_dtype)
    weight_scale = jax.random.uniform(
        k_s, (out_features // block_size, in_features // block_size),
        jnp.float32, minval=0.01, maxval=0.05)
    bias = None  # module default: bias=False
    x = jax.random.normal(k_x, (M, in_features), jnp.float32).astype(jnp.bfloat16)

    # One-time weight relayout (weight-load time, amortized over all forward calls).
    w_t, ws_cols = prepare_blockwise_weights(weight_q, weight_scale, block_size)

    # tm/tn/tk chosen so all three grid axes have 2 steps (exercises the k-accumulation path).
    y = blockwise_quant_linear(
        x, w_t, ws_cols, bias, block_size=block_size, fp8_dtype=fp8_dtype,
        tm=32, tn=512, tk=1024)
    y = jax.block_until_ready(y)
    assert y.shape == (M, out_features) and y.dtype == jnp.float32

    # Check 1 (strict): GEMM kernel vs an fp32 dequant-matmul on the kernel's own x_q / x_s
    # (only bf16 scale-folding + fp32 accumulation-order differences remain).
    x_q, x_s = fp8_blockwise_act_quant(x, block_size, fp8_dtype)
    x_deq = x_q.astype(jnp.float32) * jnp.repeat(x_s, block_size, axis=1)
    w_s_full = jnp.repeat(jnp.repeat(weight_scale, block_size, axis=0), block_size, axis=1)
    w_deq = weight_q.astype(jnp.float32) * w_s_full
    y_gemm_ref = jnp.dot(x_deq, w_deq.T, precision=jax.lax.Precision.HIGHEST)
    np.testing.assert_allclose(np.asarray(y), np.asarray(y_gemm_ref), rtol=2e-2, atol=2e-2)

    # Check 2 (end-to-end torchao semantics, quantization recomputed independently by XLA).
    # Slightly looser: an fp8 round-to-nearest boundary flip between the kernel's and XLA's
    # f32 divide can legitimately move isolated outputs by a few 1e-2.
    y_ref = reference_forward(x, weight_q, weight_scale, bias, block_size, fp8_dtype)
    np.testing.assert_allclose(np.asarray(y), np.asarray(y_ref), rtol=5e-2, atol=5e-2)

    print("KERNEL_OK")
</pallas_src>

<mosaic_0001>
module attributes {stable_mosaic.version = 11 : i64} {
  func.func @_act_quant_kernel(%arg0: i32, %arg1: memref<64x2048xbf16, #tpu.memory_space<vmem>>, %arg2: memref<64x2048xf8E4M3FN, #tpu.memory_space<vmem>>, %arg3: memref<64x16xf32, #tpu.memory_space<vmem>>) attributes {dimension_semantics = [#tpu.dimension_semantics<parallel>], iteration_bounds = array<i64: 1>, scalar_prefetch = 0 : i64, scratch_operands = 0 : i64, tpu.core_type = #tpu.core_type<tc>, window_params = [{transform_indices = @transform_0, window_bounds = array<i64: 64, 2048>}, {transform_indices = @transform_1, window_bounds = array<i64: 64, 2048>}, {transform_indices = @transform_2, window_bounds = array<i64: 64, 16>}]} {
    %c0 = arith.constant 0 : index
    %c0_0 = arith.constant 0 : index
    %0 = vector.load %arg1[%c0, %c0_0] : memref<64x2048xbf16, #tpu.memory_space<vmem>>, vector<64x128xbf16>
    %1 = arith.extf %0 : vector<64x128xbf16> to vector<64x128xf32>
    %2 = math.absf %1 : vector<64x128xf32>
    %cst = arith.constant dense<0xFF800000> : vector<64xf32>
    %3 = vector.multi_reduction <maximumf>, %2, %cst [1] : vector<64x128xf32> to vector<64xf32>
    %4 = vector.shape_cast %3 : vector<64xf32> to vector<64x1xf32>
    %cst_1 = arith.constant 4.480000e+02 : f32
    %5 = vector.broadcast %cst_1 : f32 to vector<64x1xf32>
    %6 = arith.divf %4, %5 : vector<64x1xf32>
    %7 = vector.broadcast %6 : vector<64x1xf32> to vector<64x128xf32>
    %8 = arith.divf %1, %7 : vector<64x128xf32>
    %9 = arith.truncf %8 : vector<64x128xf32> to vector<64x128xf8E4M3FN>
    %c0_2 = arith.constant 0 : index
    %c0_3 = arith.constant 0 : index
    %10 = vector.load %arg2[%c0_2, %c0_3] : memref<64x2048xf8E4M3FN, #tpu.memory_space<vmem>>, vector<64x128xf8E4M3FN>
    tpu.vector_store %arg2[%c0_2, %c0_3], %9 {strides = array<i32>} : memref<64x2048xf8E4M3FN, #tpu.memory_space<vmem>>, vector<64x128xf8E4M3FN>,
    %c0_4 = arith.constant 0 : index
    %c0_5 = arith.constant 0 : index
    %11 = vector.load %arg3[%c0_4, %c0_5] : memref<64x16xf32, #tpu.memory_space<vmem>>, vector<64x1xf32>
    tpu.vector_store %arg3[%c0_4, %c0_5], %6 {strides = array<i32>} : memref<64x16xf32, #tpu.memory_space<vmem>>, vector<64x1xf32>,
    %c0_6 = arith.constant 0 : index
    %c128 = arith.constant 128 : index
    %12 = vector.load %arg1[%c0_6, %c128] : memref<64x2048xbf16, #tpu.memory_space<vmem>>, vector<64x128xbf16>
    %13 = arith.extf %12 : vector<64x128xbf16> to vector<64x128xf32>
    %14 = math.absf %13 : vector<64x128xf32>
    %cst_7 = arith.constant dense<0xFF800000> : vector<64xf32>
    %15 = vector.multi_reduction <maximumf>, %14, %cst_7 [1] : vector<64x128xf32> to vector<64xf32>
    %16 = vector.shape_cast %15 : vector<64xf32> to vector<64x1xf32>
    %cst_8 = arith.constant 4.480000e+02 : f32
    %17 = vector.broadcast %cst_8 : f32 to vector<64x1xf32>
    %18 = arith.divf %16, %17 : vector<64x1xf32>
    %19 = vector.broadcast %18 : vector<64x1xf32> to vector<64x128xf32>
    %20 = arith.divf %13, %19 : vector<64x128xf32>
    %21 = arith.truncf %20 : vector<64x128xf32> to vector<64x128xf8E4M3FN>
    %c0_9 = arith.constant 0 : index
    %c128_10 = arith.constant 128 : index
    %22 = vector.load %arg2[%c0_9, %c128_10] : memref<64x2048xf8E4M3FN, #tpu.memory_space<vmem>>, vector<64x128xf8E4M3FN>
    tpu.vector_store %arg2[%c0_9, %c128_10], %21 {strides = array<i32>} : memref<64x2048xf8E4M3FN, #tpu.memory_space<vmem>>, vector<64x128xf8E4M3FN>,
    %c0_11 = arith.constant 0 : index
    %c1 = arith.constant 1 : index
    %23 = vector.load %arg3[%c0_11, %c1] : memref<64x16xf32, #tpu.memory_space<vmem>>, vector<64x1xf32>
    tpu.vector_store %arg3[%c0_11, %c1], %18 {strides = array<i32>} : memref<64x16xf32, #tpu.memory_space<vmem>>, vector<64x1xf32>,
    %c0_12 = arith.constant 0 : index
    %c256 = arith.constant 256 : index
    %24 = vector.load %arg1[%c0_12, %c256] : memref<64x2048xbf16, #tpu.memory_space<vmem>>, vector<64x128xbf16>
    %25 = arith.extf %24 : vector<64x128xbf16> to vector<64x128xf32>
    %26 = math.absf %25 : vector<64x128xf32>
    %cst_13 = arith.constant dense<0xFF800000> : vector<64xf32>
    %27 = vector.multi_reduction <maximumf>, %26, %cst_13 [1] : vector<64x128xf32> to vector<64xf32>
    %28 = vector.shape_cast %27 : vector<64xf32> to vector<64x1xf32>
    %cst_14 = arith.constant 4.480000e+02 : f32
    %29 = vector.broadcast %cst_14 : f32 to vector<64x1xf32>
    %30 = arith.divf %28, %29 : vector<64x1xf32>
    %31 = vector.broadcast %30 : vector<64x1xf32> to vector<64x128xf32>
    %32 = arith.divf %25, %31 : vector<64x128xf32>
    %33 = arith.truncf %32 : vector<64x128xf32> to vector<64x128xf8E4M3FN>
    %c0_15 = arith.constant 0 : index
    %c256_16 = arith.constant 256 : index
    %34 = vector.load %arg2[%c0_15, %c256_16] : memref<64x2048xf8E4M3FN, #tpu.memory_space<vmem>>, vector<64x128xf8E4M3FN>
    tpu.vector_store %arg2[%c0_15, %c256_16], %33 {strides = array<i32>} : memref<64x2048xf8E4M3FN, #tpu.memory_space<vmem>>, vector<64x128xf8E4M3FN>,
    %c0_17 = arith.constant 0 : index
    %c2 = arith.constant 2 : index
    %35 = vector.load %arg3[%c0_17, %c2] : memref<64x16xf32, #tpu.memory_space<vmem>>, vector<64x1xf32>
    tpu.vector_store %arg3[%c0_17, %c2], %30 {strides = array<i32>} : memref<64x16xf32, #tpu.memory_space<vmem>>, vector<64x1xf32>,
    %c0_18 = arith.constant 0 : index
    %c384 = arith.constant 384 : index
    %36 = vector.load %arg1[%c0_18, %c384] : memref<64x2048xbf16, #tpu.memory_space<vmem>>, vector<64x128xbf16>
    %37 = arith.extf %36 : vector<64x128xbf16> to vector<64x128xf32>
    %38 = math.absf %37 : vector<64x128xf32>
    %cst_19 = arith.constant dense<0xFF800000> : vector<64xf32>
    %39 = vector.multi_reduction <maximumf>, %38, %cst_19 [1] : vector<64x128xf32> to vector<64xf32>
    %40 = vector.shape_cast %39 : vector<64xf32> to vector<64x1xf32>
    %cst_20 = arith.constant 4.480000e+02 : f32
    %41 = vector.broadcast %cst_20 : f32 to vector<64x1xf32>
    %42 = arith.divf %40, %41 : vector<64x1xf32>
    %43 = vector.broadcast %42 : vector<64x1xf32> to vector<64x128xf32>
    %44 = arith.divf %37, %43 : vector<64x128xf32>
    %45 = arith.truncf %44 : vector<64x128xf32> to vector<64x128xf8E4M3FN>
    %c0_21 = arith.constant 0 : index
    %c384_22 = arith.constant 384 : index
    %46 = vector.load %arg2[%c0_21, %c384_22] : memref<64x2048xf8E4M3FN, #tpu.memory_space<vmem>>, vector<64x128xf8E4M3FN>
    tpu.vector_store %arg2[%c0_21, %c384_22], %45 {strides = array<i32>} : memref<64x2048xf8E4M3FN, #tpu.memory_space<vmem>>, vector<64x128xf8E4M3FN>,
    %c0_23 = arith.constant 0 : index
    %c3 = arith.constant 3 : index
    %47 = vector.load %arg3[%c0_23, %c3] : memref<64x16xf32, #tpu.memory_space<vmem>>, vector<64x1xf32>
    tpu.vector_store %arg3[%c0_23, %c3], %42 {strides = array<i32>} : memref<64x16xf32, #tpu.memory_space<vmem>>, vector<64x1xf32>,
    %c0_24 = arith.constant 0 : index
    %c512 = arith.constant 512 : index
    %48 = vector.load %arg1[%c0_24, %c512] : memref<64x2048xbf16, #tpu.memory_space<vmem>>, vector<64x128xbf16>
    %49 = arith.extf %48 : vector<64x128xbf16> to vector<64x128xf32>
    %50 = math.absf %49 : vector<64x128xf32>
    %cst_25 = arith.constant dense<0xFF800000> : vector<64xf32>
    %51 = vector.multi_reduction <maximumf>, %50, %cst_25 [1] : vector<64x128xf32> to vector<64xf32>
    %52 = vector.shape_cast %51 : vector<64xf32> to vector<64x1xf32>
    %cst_26 = arith.constant 4.480000e+02 : f32
    %53 = vector.broadcast %cst_26 : f32 to vector<64x1xf32>
    %54 = arith.divf %52, %53 : vector<64x1xf32>
    %55 = vector.broadcast %54 : vector<64x1xf32> to vector<64x128xf32>
    %56 = arith.divf %49, %55 : vector<64x128xf32>
    %57 = arith.truncf %56 : vector<64x128xf32> to vector<64x128xf8E4M3FN>
    %c0_27 = arith.constant 0 : index
    %c512_28 = arith.constant 512 : index
    %58 = vector.load %arg2[%c0_27, %c512_28] : memref<64x2048xf8E4M3FN, #tpu.memory_space<vmem>>, vector<64x128xf8E4M3FN>
    tpu.vector_store %arg2[%c0_27, %c512_28], %57 {strides = array<i32>} : memref<64x2048xf8E4M3FN, #tpu.memory_space<vmem>>, vector<64x128xf8E4M3FN>,
    %c0_29 = arith.constant 0 : index
    %c4 = arith.constant 4 : index
    %59 = vector.load %arg3[%c0_29, %c4] : memref<64x16xf32, #tpu.memory_space<vmem>>, vector<64x1xf32>
    tpu.vector_store %arg3[%c0_29, %c4], %54 {strides = array<i32>} : memref<64x16xf32, #tpu.memory_space<vmem>>, vector<64x1xf32>,
    %c0_30 = arith.constant 0 : index
    %c640 = arith.constant 640 : index
    %60 = vector.load %arg1[%c0_30, %c640] : memref<64x2048xbf16, #tpu.memory_space<vmem>>, vector<64x128xbf16>
    %61 = arith.extf %60 : vector<64x128xbf16> to vector<64x128xf32>
    %62 = math.absf %61 : vector<64x128xf32>
    %cst_31 = arith.constant dense<0xFF800000> : vector<64xf32>
    %63 = vector.multi_reduction <maximumf>, %62, %cst_31 [1] : vector<64x128xf32> to vector<64xf32>
    %64 = vector.shape_cast %63 : vector<64xf32> to vector<64x1xf32>
    %cst_32 = arith.constant 4.480000e+02 : f32
    %65 = vector.broadcast %cst_32 : f32 to vector<64x1xf32>
    %66 = arith.divf %64, %65 : vector<64x1xf32>
    %67 = vector.broadcast %66 : vector<64x1xf32> to vector<64x128xf32>
    %68 = arith.divf %61, %67 : vector<64x128xf32>
    %69 = arith.truncf %68 : vector<64x128xf32> to vector<64x128xf8E4M3FN>
    %c0_33 = arith.constant 0 : index
    %c640_34 = arith.constant 640 : index
    %70 = vector.load %arg2[%c0_33, %c640_34] : memref<64x2048xf8E4M3FN, #tpu.memory_space<vmem>>, vector<64x128xf8E4M3FN>
    tpu.vector_store %arg2[%c0_33, %c640_34], %69 {strides = array<i32>} : memref<64x2048xf8E4M3FN, #tpu.memory_space<vmem>>, vector<64x128xf8E4M3FN>,
    %c0_35 = arith.constant 0 : index
    %c5 = arith.constant 5 : index
    %71 = vector.load %arg3[%c0_35, %c5] : memref<64x16xf32, #tpu.memory_space<vmem>>, vector<64x1xf32>
    tpu.vector_store %arg3[%c0_35, %c5], %66 {strides = array<i32>} : memref<64x16xf32, #tpu.memory_space<vmem>>, vector<64x1xf32>,
    %c0_36 = arith.constant 0 : index
    %c768 = arith.constant 768 : index
    %72 = vector.load %arg1[%c0_36, %c768] : memref<64x2048xbf16, #tpu.memory_space<vmem>>, vector<64x128xbf16>
    %73 = arith.extf %72 : vector<64x128xbf16> to vector<64x128xf32>
    %74 = math.absf %73 : vector<64x128xf32>
    %cst_37 = arith.constant dense<0xFF800000> : vector<64xf32>
    %75 = vector.multi_reduction <maximumf>, %74, %cst_37 [1] : vector<64x128xf32> to vector<64xf32>
    %76 = vector.shape_cast %75 : vector<64xf32> to vector<64x1xf32>
    %cst_38 = arith.constant 4.480000e+02 : f32
    %77 = vector.broadcast %cst_38 : f32 to vector<64x1xf32>
    %78 = arith.divf %76, %77 : vector<64x1xf32>
    %79 = vector.broadcast %78 : vector<64x1xf32> to vector<64x128xf32>
    %80 = arith.divf %73, %79 : vector<64x128xf32>
    %81 = arith.truncf %80 : vector<64x128xf32> to vector<64x128xf8E4M3FN>
    %c0_39 = arith.constant 0 : index
    %c768_40 = arith.constant 768 : index
    %82 = vector.load %arg2[%c0_39, %c768_40] : memref<64x2048xf8E4M3FN, #tpu.memory_space<vmem>>, vector<64x128xf8E4M3FN>
    tpu.vector_store %arg2[%c0_39, %c768_40], %81 {strides = array<i32>} : memref<64x2048xf8E4M3FN, #tpu.memory_space<vmem>>, vector<64x128xf8E4M3FN>,
    %c0_41 = arith.constant 0 : index
    %c6 = arith.constant 6 : index
    %83 = vector.load %arg3[%c0_41, %c6] : memref<64x16xf32, #tpu.memory_space<vmem>>, vector<64x1xf32>
    tpu.vector_store %arg3[%c0_41, %c6], %78 {strides = array<i32>} : memref<64x16xf32, #tpu.memory_space<vmem>>, vector<64x1xf32>,
    %c0_42 = arith.constant 0 : index
    %c896 = arith.constant 896 : index
    %84 = vector.load %arg1[%c0_42, %c896] : memref<64x2048xbf16, #tpu.memory_space<vmem>>, vector<64x128xbf16>
    %85 = arith.extf %84 : vector<64x128xbf16> to vector<64x128xf32>
    %86 = math.absf %85 : vector<64x128xf32>
    %cst_43 = arith.constant dense<0xFF800000> : vector<64xf32>
    %87 = vector.multi_reduction <maximumf>, %86, %cst_43 [1] : vector<64x128xf32> to vector<64xf32>
    %88 = vector.shape_cast %87 : vector<64xf32> to vector<64x1xf32>
    %cst_44 = arith.constant 4.480000e+02 : f32
    %89 = vector.broadcast %cst_44 : f32 to vector<64x1xf32>
    %90 = arith.divf %88, %89 : vector<64x1xf32>
    %91 = vector.broadcast %90 : vector<64x1xf32> to vector<64x128xf32>
    %92 = arith.divf %85, %91 : vector<64x128xf32>
    %93 = arith.truncf %92 : vector<64x128xf32> to vector<64x128xf8E4M3FN>
    %c0_45 = arith.constant 0 : index
    %c896_46 = arith.constant 896 : index
    %94 = vector.load %arg2[%c0_45, %c896_46] : memref<64x2048xf8E4M3FN, #tpu.memory_space<vmem>>, vector<64x128xf8E4M3FN>
    tpu.vector_store %arg2[%c0_45, %c896_46], %93 {strides = array<i32>} : memref<64x2048xf8E4M3FN, #tpu.memory_space<vmem>>, vector<64x128xf8E4M3FN>,
    %c0_47 = arith.constant 0 : index
    %c7 = arith.constant 7 : index
    %95 = vector.load %arg3[%c0_47, %c7] : memref<64x16xf32, #tpu.memory_space<vmem>>, vector<64x1xf32>
    tpu.vector_store %arg3[%c0_47, %c7], %90 {strides = array<i32>} : memref<64x16xf32, #tpu.memory_space<vmem>>, vector<64x1xf32>,
    %c0_48 = arith.constant 0 : index
    %c1024 = arith.constant 1024 : index
    %96 = vector.load %arg1[%c0_48, %c1024] : memref<64x2048xbf16, #tpu.memory_space<vmem>>, vector<64x128xbf16>
    %97 = arith.extf %96 : vector<64x128xbf16> to vector<64x128xf32>
    %98 = math.absf %97 : vector<64x128xf32>
    %cst_49 = arith.constant dense<0xFF800000> : vector<64xf32>
    %99 = vector.multi_reduction <maximumf>, %98, %cst_49 [1] : vector<64x128xf32> to vector<64xf32>
    %100 = vector.shape_cast %99 : vector<64xf32> to vector<64x1xf32>
    %cst_50 = arith.constant 4.480000e+02 : f32
    %101 = vector.broadcast %cst_50 : f32 to vector<64x1xf32>
    %102 = arith.divf %100, %101 : vector<64x1xf32>
    %103 = vector.broadcast %102 : vector<64x1xf32> to vector<64x128xf32>
    %104 = arith.divf %97, %103 : vector<64x128xf32>
    %105 = arith.truncf %104 : vector<64x128xf32> to vector<64x128xf8E4M3FN>
    %c0_51 = arith.constant 0 : index
    %c1024_52 = arith.constant 1024 : index
    %106 = vector.load %arg2[%c0_51, %c1024_52] : memref<64x2048xf8E4M3FN, #tpu.memory_space<vmem>>, vector<64x128xf8E4M3FN>
    tpu.vector_store %arg2[%c0_51, %c1024_52], %105 {strides = array<i32>} : memref<64x2048xf8E4M3FN, #tpu.memory_space<vmem>>, vector<64x128xf8E4M3FN>,
    %c0_53 = arith.constant 0 : index
    %c8 = arith.constant 8 : index
    %107 = vector.load %arg3[%c0_53, %c8] : memref<64x16xf32, #tpu.memory_space<vmem>>, vector<64x1xf32>
    tpu.vector_store %arg3[%c0_53, %c8], %102 {strides = array<i32>} : memref<64x16xf32, #tpu.memory_space<vmem>>, vector<64x1xf32>,
    %c0_54 = arith.constant 0 : index
    %c1152 = arith.constant 1152 : index
    %108 = vector.load %arg1[%c0_54, %c1152] : memref<64x2048xbf16, #tpu.memory_space<vmem>>, vector<64x128xbf16>
    %109 = arith.extf %108 : vector<64x128xbf16> to vector<64x128xf32>
    %110 = math.absf %109 : vector<64x128xf32>
    %cst_55 = arith.constant dense<0xFF800000> : vector<64xf32>
    %111 = vector.multi_reduction <maximumf>, %110, %cst_55 [1] : vector<64x128xf32> to vector<64xf32>
    %112 = vector.shape_cast %111 : vector<64xf32> to vector<64x1xf32>
    %cst_56 = arith.constant 4.480000e+02 : f32
    %113 = vector.broadcast %cst_56 : f32 to vector<64x1xf32>
    %114 = arith.divf %112, %113 : vector<64x1xf32>
    %115 = vector.broadcast %114 : vector<64x1xf32> to vector<64x128xf32>
    %116 = arith.divf %109, %115 : vector<64x128xf32>
    %117 = arith.truncf %116 : vector<64x128xf32> to vector<64x128xf8E4M3FN>
    %c0_57 = arith.constant 0 : index
    %c1152_58 = arith.constant 1152 : index
    %118 = vector.load %arg2[%c0_57, %c1152_58] : memref<64x2048xf8E4M3FN, #tpu.memory_space<vmem>>, vector<64x128xf8E4M3FN>
    tpu.vector_store %arg2[%c0_57, %c1152_58], %117 {strides = array<i32>} : memref<64x2048xf8E4M3FN, #tpu.memory_space<vmem>>, vector<64x128xf8E4M3FN>,
    %c0_59 = arith.constant 0 : index
    %c9 = arith.constant 9 : index
    %119 = vector.load %arg3[%c0_59, %c9] : memref<64x16xf32, #tpu.memory_space<vmem>>, vector<64x1xf32>
    tpu.vector_store %arg3[%c0_59, %c9], %114 {strides = array<i32>} : memref<64x16xf32, #tpu.memory_space<vmem>>, vector<64x1xf32>,
    %c0_60 = arith.constant 0 : index
    %c1280 = arith.constant 1280 : index
    %120 = vector.load %arg1[%c0_60, %c1280] : memref<64x2048xbf16, #tpu.memory_space<vmem>>, vector<64x128xbf16>
    %121 = arith.extf %120 : vector<64x128xbf16> to vector<64x128xf32>
    %122 = math.absf %121 : vector<64x128xf32>
    %cst_61 = arith.constant dense<0xFF800000> : vector<64xf32>
    %123 = vector.multi_reduction <maximumf>, %122, %cst_61 [1] : vector<64x128xf32> to vector<64xf32>
    %124 = vector.shape_cast %123 : vector<64xf32> to vector<64x1xf32>
    %cst_62 = arith.constant 4.480000e+02 : f32
    %125 = vector.broadcast %cst_62 : f32 to vector<64x1xf32>
    %126 = arith.divf %124, %125 : vector<64x1xf32>
    %127 = vector.broadcast %126 : vector<64x1xf32> to vector<64x128xf32>
    %128 = arith.divf %121, %127 : vector<64x128xf32>
    %129 = arith.truncf %128 : vector<64x128xf32> to vector<64x128xf8E4M3FN>
    %c0_63 = arith.constant 0 : index
    %c1280_64 = arith.constant 1280 : index
    %130 = vector.load %arg2[%c0_63, %c1280_64] : memref<64x2048xf8E4M3FN, #tpu.memory_space<vmem>>, vector<64x128xf8E4M3FN>
    tpu.vector_store %arg2[%c0_63, %c1280_64], %129 {strides = array<i32>} : memref<64x2048xf8E4M3FN, #tpu.memory_space<vmem>>, vector<64x128xf8E4M3FN>,
    %c0_65 = arith.constant 0 : index
    %c10 = arith.constant 10 : index
    %131 = vector.load %arg3[%c0_65, %c10] : memref<64x16xf32, #tpu.memory_space<vmem>>, vector<64x1xf32>
    tpu.vector_store %arg3[%c0_65, %c10], %126 {strides = array<i32>} : memref<64x16xf32, #tpu.memory_space<vmem>>, vector<64x1xf32>,
    %c0_66 = arith.constant 0 : index
    %c1408 = arith.constant 1408 : index
    %132 = vector.load %arg1[%c0_66, %c1408] : memref<64x2048xbf16, #tpu.memory_space<vmem>>, vector<64x128xbf16>
    %133 = arith.extf %132 : vector<64x128xbf16> to vector<64x128xf32>
    %134 = math.absf %133 : vector<64x128xf32>
    %cst_67 = arith.constant dense<0xFF800000> : vector<64xf32>
    %135 = vector.multi_reduction <maximumf>, %134, %cst_67 [1] : vector<64x128xf32> to vector<64xf32>
    %136 = vector.shape_cast %135 : vector<64xf32> to vector<64x1xf32>
    %cst_68 = arith.constant 4.480000e+02 : f32
    %137 = vector.broadcast %cst_68 : f32 to vector<64x1xf32>
    %138 = arith.divf %136, %137 : vector<64x1xf32>
    %139 = vector.broadcast %138 : vector<64x1xf32> to vector<64x128xf32>
    %140 = arith.divf %133, %139 : vector<64x128xf32>
    %141 = arith.truncf %140 : vector<64x128xf32> to vector<64x128xf8E4M3FN>
    %c0_69 = arith.constant 0 : index
    %c1408_70 = arith.constant 1408 : index
    %142 = vector.load %arg2[%c0_69, %c1408_70] : memref<64x2048xf8E4M3FN, #tpu.memory_space<vmem>>, vector<64x128xf8E4M3FN>
    tpu.vector_store %arg2[%c0_69, %c1408_70], %141 {strides = array<i32>} : memref<64x2048xf8E4M3FN, #tpu.memory_space<vmem>>, vector<64x128xf8E4M3FN>,
    %c0_71 = arith.constant 0 : index
    %c11 = arith.constant 11 : index
    %143 = vector.load %arg3[%c0_71, %c11] : memref<64x16xf32, #tpu.memory_space<vmem>>, vector<64x1xf32>
    tpu.vector_store %arg3[%c0_71, %c11], %138 {strides = array<i32>} : memref<64x16xf32, #tpu.memory_space<vmem>>, vector<64x1xf32>,
    %c0_72 = arith.constant 0 : index
    %c1536 = arith.constant 1536 : index
    %144 = vector.load %arg1[%c0_72, %c1536] : memref<64x2048xbf16, #tpu.memory_space<vmem>>, vector<64x128xbf16>
    %145 = arith.extf %144 : vector<64x128xbf16> to vector<64x128xf32>
    %146 = math.absf %145 : vector<64x128xf32>
    %cst_73 = arith.constant dense<0xFF800000> : vector<64xf32>
    %147 = vector.multi_reduction <maximumf>, %146, %cst_73 [1] : vector<64x128xf32> to vector<64xf32>
    %148 = vector.shape_cast %147 : vector<64xf32> to vector<64x1xf32>
    %cst_74 = arith.constant 4.480000e+02 : f32
    %149 = vector.broadcast %cst_74 : f32 to vector<64x1xf32>
    %150 = arith.divf %148, %149 : vector<64x1xf32>
    %151 = vector.broadcast %150 : vector<64x1xf32> to vector<64x128xf32>
    %152 = arith.divf %145, %151 : vector<64x128xf32>
    %153 = arith.truncf %152 : vector<64x128xf32> to vector<64x128xf8E4M3FN>
    %c0_75 = arith.constant 0 : index
    %c1536_76 = arith.constant 1536 : index
    %154 = vector.load %arg2[%c0_75, %c1536_76] : memref<64x2048xf8E4M3FN, #tpu.memory_space<vmem>>, vector<64x128xf8E4M3FN>
    tpu.vector_store %arg2[%c0_75, %c1536_76], %153 {strides = array<i32>} : memref<64x2048xf8E4M3FN, #tpu.memory_space<vmem>>, vector<64x128xf8E4M3FN>,
    %c0_77 = arith.constant 0 : index
    %c12 = arith.constant 12 : index
    %155 = vector.load %arg3[%c0_77, %c12] : memref<64x16xf32, #tpu.memory_space<vmem>>, vector<64x1xf32>
    tpu.vector_store %arg3[%c0_77, %c12], %150 {strides = array<i32>} : memref<64x16xf32, #tpu.memory_space<vmem>>, vector<64x1xf32>,
    %c0_78 = arith.constant 0 : index
    %c1664 = arith.constant 1664 : index
    %156 = vector.load %arg1[%c0_78, %c1664] : memref<64x2048xbf16, #tpu.memory_space<vmem>>, vector<64x128xbf16>
    %157 = arith.extf %156 : vector<64x128xbf16> to vector<64x128xf32>
    %158 = math.absf %157 : vector<64x128xf32>
    %cst_79 = arith.constant dense<0xFF800000> : vector<64xf32>
    %159 = vector.multi_reduction <maximumf>, %158, %cst_79 [1] : vector<64x128xf32> to vector<64xf32>
    %160 = vector.shape_cast %159 : vector<64xf32> to vector<64x1xf32>
    %cst_80 = arith.constant 4.480000e+02 : f32
    %161 = vector.broadcast %cst_80 : f32 to vector<64x1xf32>
    %162 = arith.divf %160, %161 : vector<64x1xf32>
    %163 = vector.broadcast %162 : vector<64x1xf32> to vector<64x128xf32>
    %164 = arith.divf %157, %163 : vector<64x128xf32>
    %165 = arith.truncf %164 : vector<64x128xf32> to vector<64x128xf8E4M3FN>
    %c0_81 = arith.constant 0 : index
    %c1664_82 = arith.constant 1664 : index
    %166 = vector.load %arg2[%c0_81, %c1664_82] : memref<64x2048xf8E4M3FN, #tpu.memory_space<vmem>>, vector<64x128xf8E4M3FN>
    tpu.vector_store %arg2[%c0_81, %c1664_82], %165 {strides = array<i32>} : memref<64x2048xf8E4M3FN, #tpu.memory_space<vmem>>, vector<64x128xf8E4M3FN>,
    %c0_83 = arith.constant 0 : index
    %c13 = arith.constant 13 : index
    %167 = vector.load %arg3[%c0_83, %c13] : memref<64x16xf32, #tpu.memory_space<vmem>>, vector<64x1xf32>
    tpu.vector_store %arg3[%c0_83, %c13], %162 {strides = array<i32>} : memref<64x16xf32, #tpu.memory_space<vmem>>, vector<64x1xf32>,
    %c0_84 = arith.constant 0 : index
    %c1792 = arith.constant 1792 : index
    %168 = vector.load %arg1[%c0_84, %c1792] : memref<64x2048xbf16, #tpu.memory_space<vmem>>, vector<64x128xbf16>
    %169 = arith.extf %168 : vector<64x128xbf16> to vector<64x128xf32>
    %170 = math.absf %169 : vector<64x128xf32>
    %cst_85 = arith.constant dense<0xFF800000> : vector<64xf32>
    %171 = vector.multi_reduction <maximumf>, %170, %cst_85 [1] : vector<64x128xf32> to vector<64xf32>
    %172 = vector.shape_cast %171 : vector<64xf32> to vector<64x1xf32>
    %cst_86 = arith.constant 4.480000e+02 : f32
    %173 = vector.broadcast %cst_86 : f32 to vector<64x1xf32>
    %174 = arith.divf %172, %173 : vector<64x1xf32>
    %175 = vector.broadcast %174 : vector<64x1xf32> to vector<64x128xf32>
    %176 = arith.divf %169, %175 : vector<64x128xf32>
    %177 = arith.truncf %176 : vector<64x128xf32> to vector<64x128xf8E4M3FN>
    %c0_87 = arith.constant 0 : index
    %c1792_88 = arith.constant 1792 : index
    %178 = vector.load %arg2[%c0_87, %c1792_88] : memref<64x2048xf8E4M3FN, #tpu.memory_space<vmem>>, vector<64x128xf8E4M3FN>
    tpu.vector_store %arg2[%c0_87, %c1792_88], %177 {strides = array<i32>} : memref<64x2048xf8E4M3FN, #tpu.memory_space<vmem>>, vector<64x128xf8E4M3FN>,
    %c0_89 = arith.constant 0 : index
    %c14 = arith.constant 14 : index
    %179 = vector.load %arg3[%c0_89, %c14] : memref<64x16xf32, #tpu.memory_space<vmem>>, vector<64x1xf32>
    tpu.vector_store %arg3[%c0_89, %c14], %174 {strides = array<i32>} : memref<64x16xf32, #tpu.memory_space<vmem>>, vector<64x1xf32>,
    %c0_90 = arith.constant 0 : index
    %c1920 = arith.constant 1920 : index
    %180 = vector.load %arg1[%c0_90, %c1920] : memref<64x2048xbf16, #tpu.memory_space<vmem>>, vector<64x128xbf16>
    %181 = arith.extf %180 : vector<64x128xbf16> to vector<64x128xf32>
    %182 = math.absf %181 : vector<64x128xf32>
    %cst_91 = arith.constant dense<0xFF800000> : vector<64xf32>
    %183 = vector.multi_reduction <maximumf>, %182, %cst_91 [1] : vector<64x128xf32> to vector<64xf32>
    %184 = vector.shape_cast %183 : vector<64xf32> to vector<64x1xf32>
    %cst_92 = arith.constant 4.480000e+02 : f32
    %185 = vector.broadcast %cst_92 : f32 to vector<64x1xf32>
    %186 = arith.divf %184, %185 : vector<64x1xf32>
    %187 = vector.broadcast %186 : vector<64x1xf32> to vector<64x128xf32>
    %188 = arith.divf %181, %187 : vector<64x128xf32>
    %189 = arith.truncf %188 : vector<64x128xf32> to vector<64x128xf8E4M3FN>
    %c0_93 = arith.constant 0 : index
    %c1920_94 = arith.constant 1920 : index
    %190 = vector.load %arg2[%c0_93, %c1920_94] : memref<64x2048xf8E4M3FN, #tpu.memory_space<vmem>>, vector<64x128xf8E4M3FN>
    tpu.vector_store %arg2[%c0_93, %c1920_94], %189 {strides = array<i32>} : memref<64x2048xf8E4M3FN, #tpu.memory_space<vmem>>, vector<64x128xf8E4M3FN>,
    %c0_95 = arith.constant 0 : index
    %c15 = arith.constant 15 : index
    %191 = vector.load %arg3[%c0_95, %c15] : memref<64x16xf32, #tpu.memory_space<vmem>>, vector<64x1xf32>
    tpu.vector_store %arg3[%c0_95, %c15], %186 {strides = array<i32>} : memref<64x16xf32, #tpu.memory_space<vmem>>, vector<64x1xf32>,
    return
  }
  func.func @transform_0(%arg0: i32) -> (i32, i32) {
    %c0_i32 = arith.constant 0 : i32
    %c0_i32_0 = arith.constant 0 : i32
    return %arg0, %c0_i32 : i32, i32
  }
  func.func @transform_1(%arg0: i32) -> (i32, i32) {
    %c0_i32 = arith.constant 0 : i32
    %c0_i32_0 = arith.constant 0 : i32
    return %arg0, %c0_i32 : i32, i32
  }
  func.func @transform_2(%arg0: i32) -> (i32, i32) {
    %c0_i32 = arith.constant 0 : i32
    %c0_i32_0 = arith.constant 0 : i32
    return %arg0, %c0_i32 : i32, i32
  }
}

</mosaic_0001>

<bundles_post_ra>
// kernel: tpu_custom_call.1
= control target key start
LH: loop header
LB: loop body
LE: loop exit
PB: predicated region body
PF: predicated region fallthrough
CT: control target
= control target key end

     0   :  { %8 = vsyncpa [#allocation3], 0  ;;  %s3202_s0 = inlined_call_operand.hbm [shape: bf16[64,2048], index: 0, kind: input, shape index: {}]   ;;  %s3203_s1 = inlined_call_operand.hbm [shape: f8e4m3fn[64,2048], index: 1, kind: output, shape index: {0}]   ;;  %s3204_s2 = inlined_call_operand.vmem [shape: f32[64,16], index: 2, kind: output, shape index: {1}]  }
   0x1   :  { %9 = vsyncpa [#allocation4], 0  ;;  %s1877_s9 = smov [#allocation2]   ;;  %s1829_s13 = scalar_lea.hbm %s3202_s0, 8192 }
   0x2   :  { %s15_s10 = sshll.u32 %s1877_s9, 4  ;;  %p1830_p0 = scmp.ne.s32.totalorder %s3202_s0, %s1829_s13  ;;  %s16_s10 = int_to_ptr.vmem [resolvable:$true] %s15_s10 }
   0x3   :  { %p1833_p1 = scmp.lt.u32.totalorder %s1829_s13, %s3202_s0 }
   0x5   :  { %p1835_p2 = pnand %p1833_p1, %p1830_p0 }
   0x7   :  { %1838 = shalt.err (!%p1835_p2)
}
   0x8   :  { %s1839_s18 = scalar_lea.vmem %s16_s10, 8192  ;;  %p1844_p4 = scmp.lt.s32.totalorder %s16_s10, %s16_s10 }
   0x9   :  { %p1840_p3 = scmp.ne.s32.totalorder %s16_s10, %s1839_s18  ;;  %p1845_p5 = scmp.lt.s32.totalorder %s1839_s18, %s1839_s18 }
   0xb   :  { %p1846_p6 = por %p1845_p5, %p1844_p4 }
   0xd   :  { %p1847_p7 = pnand %p1846_p6, %p1840_p3 }
   0xf   :  { %1850 = shalt.err (!%p1847_p7)
}
  0x10   :  { %s1878_s19 = smov 1024   ;;  %s1879_s20 = smov 64  }
  0x11   :  { %21 = dma.hbm_to_vmem [thread:$0]  %s3202_s0, 8192, %s16_s10, [#allocation3], %s1878_s19, %s1878_s19, %s1879_s20  }
  0x12   :  { %1873 = dma.done.wait [#allocation3], 8192  }
  0x13   :  { %1874 = vsyncadd [#allocation3], 4294959104  ;;  %v1910_v0 = vld [vmem:[#allocation2 + $0x80] sm:$0xff]   ;;  %v1970_v38 = vld [vmem:[#allocation2 + $0x48] sm:$0xff]   ;;  %vm112_vm0 = vcmask 7168   ;;  %vm207_vm1 = vcmask 15368  }
  0x14   :  { %v1912_v1 = vld [vmem:[#allocation2] sm:$0xff]   ;;  %v35_v3 = vunpack.c.l.bf16 %v1910_v0  ;;  %v3267_v29 = vunpack.c.h.bf16 %v1910_v0  ;;  %v1972_v39 = vld [vmem:[#allocation2 + $0x8] sm:$0xff]   ;;  %v3254_v42 = vunpack.c.l.bf16 %v1970_v38  ;;  %vm302_vm2 = vcmask 23568  }
  0x15   :  { %v1914_v2 = vld [vmem:[#allocation2 + $0xc0] sm:$0xff]   ;;  %v3282_v4 = vunpack.c.l.bf16 %v1912_v1  ;;  %v3269_v25 = vunpack.c.h.bf16 %v1912_v1  ;;  %v3253_v43 = vunpack.c.l.bf16 %v1972_v39  ;;  %v1980_v44 = vld [vmem:[#allocation2 + $0xc8] sm:$0xff]   ;;  %vm397_vm3 = vcmask 31768  }
  0x16   :  { %v36_v5 = vunpack.c.l.bf16 %v1914_v2  ;;  %v1919_v6 = vld [vmem:[#allocation2 + $0x40] sm:$0xff]   ;;  %v43_v10 = vand.u32 2147483647, %v35_v3  ;;  %v3268_v28 = vunpack.c.h.bf16 %v1914_v2  ;;  %v139_v31 = vand.u32 2147483647, %v3267_v29  ;;  %v1982_v45 = vld [vmem:[#allocation2 + $0x88] sm:$0xff]  }
  0x17   :  { %v3281_v7 = vunpack.c.l.bf16 %v1919_v6  ;;  %v1922_v8 = vld [vmem:[#allocation2 + $0x140] sm:$0xff]   ;;  %v41_v11 = vand.u32 2147483647, %v3282_v4  ;;  %v3274_v24 = vunpack.c.h.bf16 %v1919_v6  ;;  %v137_v27 = vand.u32 2147483647, %v3269_v25  ;;  %v1990_v50 = vld [vmem:[#allocation2 + $0x148] sm:$0xff]  }
  0x18   :  { %v1924_v9 = vld [vmem:[#allocation2 + $0x100] sm:$0xff]   ;;  %53 = vmax.xlane.f32.xlu1 %v43_v10  ;;  %v44_v12 = vand.u32 2147483647, %v36_v5  ;;  %v3280_v14 = vunpack.c.l.bf16 %v1922_v8  ;;  %v140_v30 = vand.u32 2147483647, %v3268_v28  ;;  %v3264_v32 = vunpack.c.h.bf16 %v1922_v8  ;;  %v1992_v51 = vld [vmem:[#allocation2 + $0x108] sm:$0xff]  }
  0x19   :  { %49 = vmax.xlane.f32.xlu0 %v41_v11  ;;  %v42_v13 = vand.u32 2147483647, %v3281_v7  ;;  %v3279_v15 = vunpack.c.l.bf16 %v1924_v9  ;;  %v1936_v16 = vld [vmem:[#allocation2 + $0x1c0] sm:$0xff]   ;;  %v138_v26 = vand.u32 2147483647, %v3274_v24  ;;  %v3262_v33 = vunpack.c.h.bf16 %v1924_v9  ;;  %v2000_v56 = vld [vmem:[#allocation2 + $0x1c8] sm:$0xff]  }
  0x1a   :  { %v1938_v17 = vld [vmem:[#allocation2 + $0x180] sm:$0xff]   ;;  %v46_v18 = vand.u32 2147483647, %v3280_v14  ;;  %v3276_v20 = vunpack.c.l.bf16 %v1936_v16  ;;  %v142_v34 = vand.u32 2147483647, %v3264_v32  ;;  %v3258_v36 = vunpack.c.h.bf16 %v1936_v16  ;;  %v2002_v57 = vld [vmem:[#allocation2 + $0x188] sm:$0xff]  }
  0x1b   :  { %v45_v19 = vand.u32 2147483647, %v3279_v15  ;;  %v3275_v21 = vunpack.c.l.bf16 %v1938_v17  ;;  %v141_v35 = vand.u32 2147483647, %v3262_v33  ;;  %v3257_v37 = vunpack.c.h.bf16 %v1938_v17 }
  0x1c   :  { %55 = vmax.xlane.f32.xlu1 %v44_v12  ;;  %v48_v22 = vand.u32 2147483647, %v3276_v20  ;;  %v144_v40 = vand.u32 2147483647, %v3258_v36  ;;  %v233_v46 = vand.u32 2147483647, %v3254_v42  ;;  %v3250_v48 = vunpack.c.l.bf16 %v1980_v44 }
  0x1d   :  { %51 = vmax.xlane.f32.xlu0 %v42_v13  ;;  %v47_v23 = vand.u32 2147483647, %v3275_v21  ;;  %v143_v41 = vand.u32 2147483647, %v3257_v37  ;;  %v232_v47 = vand.u32 2147483647, %v3253_v43  ;;  %v3249_v49 = vunpack.c.l.bf16 %v1982_v45 }
  0x1e   :  { %v235_v52 = vand.u32 2147483647, %v3250_v48  ;;  %v3246_v54 = vunpack.c.l.bf16 %v1990_v50  ;;  %v3242_v55 = vunpack.c.l.bf16 %v1992_v51  ;;  %v3234_v60 = vunpack.c.l.bf16 %v2000_v56  ;;  %v2184_v48 = vld [vmem:[#allocation2 + $0x120] sm:$0xff]  }
  0x1f   :  { %v234_v53 = vand.u32 2147483647, %v3249_v49  ;;  %v3233_v61 = vunpack.c.l.bf16 %v2002_v57  ;;  %v3230_v10 = vunpack.c.h.bf16 %v1970_v38  ;;  %v3229_v11 = vunpack.c.h.bf16 %v1972_v39  ;;  %v2182_v49 = vld [vmem:[#allocation2 + $0x160] sm:$0xff]   ;;  %3330 = vst [vmem:[#allocation11_spill] sm:$0xff] %v2184_v48 }
  0x20   :  { %59 = vmax.xlane.f32.xlu1 %v46_v18  ;;  %v237_v58 = vand.u32 2147483647, %v3246_v54  ;;  %v236_v59 = vand.u32 2147483647, %v3242_v55  ;;  %v239_v62 = vand.u32 2147483647, %v3234_v60  ;;  %v3226_v18 = vunpack.c.h.bf16 %v1980_v44 }
  0x21   :  { %57 = vmax.xlane.f32.xlu0 %v45_v19  ;;  %v238_v63 = vand.u32 2147483647, %v3233_v61  ;;  %v328_v12 = vand.u32 2147483647, %v3230_v10  ;;  %v327_v13 = vand.u32 2147483647, %v3229_v11  ;;  %v3225_v19 = vunpack.c.h.bf16 %v1982_v45 }
  0x22   :  { %v2128_v11 = vld [vmem:[#allocation2 + $0x1d8] sm:$0xff]   ;;  %v2164_v55 = vld [vmem:[#allocation2 + $0x20] sm:$0xff]   ;;  %3329 = vst [vmem:[#allocation10_spill] sm:$0xff] %v2182_v49  ;;  %vm492_vm4 = vcmask 39968   ;;  %vm587_vm5 = vcmask 48168   ;;  %vm682_vm6 = vcmask 56368  }
  0x23   :  { %v2130_v10 = vld [vmem:[#allocation2 + $0x198] sm:$0xff]   ;;  %v2174_v54 = vld [vmem:[#allocation2 + $0xa0] sm:$0xff]   ;;  %vm777_vm7 = vcmask 64568   ;;  %vm872_vm8 = vcmask 72768   ;;  %vm967_vm9 = vcmask 80968   ;;  %vm1062_vm10 = vcmask 89168  }
  0x24   :  { %63 = vmax.xlane.f32.xlu1 %v48_v22  ;;  %v330_v22 = vand.u32 2147483647, %v3226_v18  ;;  %v2120_v18 = vld [vmem:[#allocation2 + $0x118] sm:$0xff]   ;;  %3328 = vst [vmem:[#allocation9_spill] sm:$0xff] %v2174_v54  ;;  %v2192_v43 = vld [vmem:[#allocation2 + $0x1e0] sm:$0xff]   ;;  %vm1157_vm11 = vcmask 97368  }
  0x25   :  { %61 = vmax.xlane.f32.xlu0 %v47_v23  ;;  %v329_v23 = vand.u32 2147483647, %v3225_v19  ;;  %v2118_v19 = vld [vmem:[#allocation2 + $0x158] sm:$0xff]   ;;  %3331 = vst [vmem:[#allocation12_spill] sm:$0xff] %v2192_v43  ;;  %v2194_v42 = vld [vmem:[#allocation2 + $0x1a0] sm:$0xff]   ;;  %v3278_v25 = vunpack.c.h.bf16 %v2192_v43  ;;  %vm1252_vm12 = vcmask 105568  }
  0x26   :  { %3332 = vst [vmem:[#allocation13_spill] sm:$0xff] %v2194_v42  ;;  %vm1347_vm13 = vcmask 113768   ;;  %vm1442_vm14 = vcmask 121968   ;;  %vm1537_vm15 = vcmask 130168  }
  0x28   :  { %147 = vmax.xlane.f32.xlu1 %v138_v26  ;;  %v3222_v26 = vunpack.c.h.bf16 %v1990_v50 }
  0x29   :  { %145 = vmax.xlane.f32.xlu0 %v137_v27  ;;  %v3218_v27 = vunpack.c.h.bf16 %v1992_v51 }
  0x2c   :  { %151 = vmax.xlane.f32.xlu1 %v140_v30  ;;  %v332_v30 = vand.u32 2147483647, %v3222_v26  ;;  %v2110_v26 = vld [vmem:[#allocation2 + $0x98] sm:$0xff]  }
  0x2d   :  { %149 = vmax.xlane.f32.xlu0 %v139_v31  ;;  %v331_v31 = vand.u32 2147483647, %v3218_v27  ;;  %v2100_v27 = vld [vmem:[#allocation2 + $0x18] sm:$0xff]  }
  0x30   :  { %155 = vmax.xlane.f32.xlu1 %v142_v34  ;;  %v3210_v34 = vunpack.c.h.bf16 %v2000_v56 }
  0x31   :  { %153 = vmax.xlane.f32.xlu0 %v141_v35  ;;  %v3209_v35 = vunpack.c.h.bf16 %v2002_v57 }
  0x34   :  { %159 = vmax.xlane.f32.xlu1 %v144_v40  ;;  %v2034_v40 = vld [vmem:[#allocation2 + $0x50] sm:$0xff]  }
  0x35   :  { %157 = vmax.xlane.f32.xlu0 %v143_v41  ;;  %v2036_v41 = vld [vmem:[#allocation2 + $0x10] sm:$0xff]  }
  0x38   :  { %242 = vmax.xlane.f32.xlu1 %v233_v46  ;;  %v334_v46 = vand.u32 2147483647, %v3210_v34 }
  0x39   :  { %240 = vmax.xlane.f32.xlu0 %v232_v47  ;;  %v333_v47 = vand.u32 2147483647, %v3209_v35 }
  0x3c   :  { %246 = vmax.xlane.f32.xlu1 %v235_v52  ;;  %v3206_v52 = vunpack.c.l.bf16 %v2034_v40 }
  0x3d   :  { %244 = vmax.xlane.f32.xlu0 %v234_v53  ;;  %v3205_v53 = vunpack.c.l.bf16 %v2036_v41 }
  0x40   :  { %250 = vmax.xlane.f32.xlu1 %v237_v58  ;;  %v2044_v58 = vld [vmem:[#allocation2 + $0xd0] sm:$0xff]  }
  0x41   :  { %248 = vmax.xlane.f32.xlu0 %v236_v59  ;;  %v2046_v59 = vld [vmem:[#allocation2 + $0x90] sm:$0xff]  }
  0x44   :  { %254 = vmax.xlane.f32.xlu1 %v239_v62  ;;  %v423_v62 = vand.u32 2147483647, %v3206_v52  ;;  %v2066_v52 = vld [vmem:[#allocation2 + $0x190] sm:$0xff]  }
  0x45   :  { %252 = vmax.xlane.f32.xlu0 %v238_v63  ;;  %v422_v63 = vand.u32 2147483647, %v3205_v53  ;;  %v2064_v53 = vld [vmem:[#allocation2 + $0x1d0] sm:$0xff]  }
  0x48   :  { %337 = vmax.xlane.f32.xlu1 %v328_v12  ;;  %v3207_v12 = vunpack.c.l.bf16 %v2044_v58 }
  0x49   :  { %335 = vmax.xlane.f32.xlu0 %v327_v13  ;;  %v3208_v13 = vunpack.c.l.bf16 %v2046_v59 }
  0x4c   :  { %341 = vmax.xlane.f32.xlu1 %v330_v22  ;;  %v2054_v22 = vld [vmem:[#allocation2 + $0x150] sm:$0xff]  }
  0x4d   :  { %339 = vmax.xlane.f32.xlu0 %v329_v23  ;;  %v2056_v23 = vld [vmem:[#allocation2 + $0x110] sm:$0xff]  }
  0x50   :  { %345 = vmax.xlane.f32.xlu1 %v332_v30  ;;  %v425_v30 = vand.u32 2147483647, %v3207_v12  ;;  %v3214_v12 = vunpack.c.l.bf16 %v2064_v53 }
  0x51   :  { %343 = vmax.xlane.f32.xlu0 %v331_v31  ;;  %v424_v31 = vand.u32 2147483647, %v3208_v13  ;;  %v3213_v13 = vunpack.c.l.bf16 %v2066_v52 }
  0x52   :  { %v429_v35 = vand.u32 2147483647, %v3214_v12 }
  0x53   :  { %v428_v34 = vand.u32 2147483647, %v3213_v13 }
  0x54   :  { %349 = vmax.xlane.f32.xlu1 %v334_v46  ;;  %v3212_v46 = vunpack.c.l.bf16 %v2054_v22 }
  0x55   :  { %347 = vmax.xlane.f32.xlu0 %v333_v47  ;;  %v3211_v47 = vunpack.c.l.bf16 %v2056_v23 }
  0x58   :  { %432 = vmax.xlane.f32.xlu1 %v423_v62  ;;  %v427_v62 = vand.u32 2147483647, %v3212_v46 }
  0x59   :  { %430 = vmax.xlane.f32.xlu0 %v422_v63  ;;  %v426_v63 = vand.u32 2147483647, %v3211_v47 }
  0x5c   :  { %436 = vmax.xlane.f32.xlu1 %v425_v30  ;;  %v3216_v30 = vunpack.c.h.bf16 %v2034_v40 }
  0x5d   :  { %434 = vmax.xlane.f32.xlu0 %v424_v31  ;;  %v3215_v31 = vunpack.c.h.bf16 %v2036_v41 }
  0x5e   :  { %v518_v47 = vand.u32 2147483647, %v3216_v30 }
  0x5f   :  { %v517_v46 = vand.u32 2147483647, %v3215_v31 }
  0x60   :  { %440 = vmax.xlane.f32.xlu1 %v427_v62  ;;  %v3217_v62 = vunpack.c.h.bf16 %v2044_v58 }
  0x61   :  { %438 = vmax.xlane.f32.xlu0 %v426_v63  ;;  %v3221_v63 = vunpack.c.h.bf16 %v2046_v59 }
  0x62   :  { %v520_v13 = vand.u32 2147483647, %v3217_v62  ;;  %v2098_v62 = vld [vmem:[#allocation2 + $0x58] sm:$0xff]  }
  0x63   :  { %v519_v12 = vand.u32 2147483647, %v3221_v63  ;;  %v2108_v63 = vld [vmem:[#allocation2 + $0xd8] sm:$0xff]  }
  0x64   :  { %444 = vmax.xlane.f32.xlu1 %v429_v35  ;;  %v3220_v35 = vunpack.c.h.bf16 %v2056_v23 }
  0x65   :  { %442 = vmax.xlane.f32.xlu0 %v428_v34  ;;  %v3219_v34 = vunpack.c.h.bf16 %v2054_v22 }
  0x66   :  { %v521_v30 = vand.u32 2147483647, %v3220_v35  ;;  %v3228_v35 = vunpack.c.l.bf16 %v2100_v27 }
  0x67   :  { %v522_v31 = vand.u32 2147483647, %v3219_v34  ;;  %v3227_v34 = vunpack.c.l.bf16 %v2098_v62 }
  0x68   :  { %527 = vmax.xlane.f32.xlu1 %v518_v47  ;;  %v3224_v47 = vunpack.c.h.bf16 %v2066_v52 }
  0x69   :  { %525 = vmax.xlane.f32.xlu0 %v517_v46  ;;  %v3223_v46 = vunpack.c.h.bf16 %v2064_v53 }
  0x6c   :  { %531 = vmax.xlane.f32.xlu1 %v520_v13  ;;  %v524_v13 = vand.u32 2147483647, %v3223_v46  ;;  %v3231_v46 = vunpack.c.l.bf16 %v2108_v63 }
  0x6d   :  { %529 = vmax.xlane.f32.xlu0 %v519_v12  ;;  %v523_v12 = vand.u32 2147483647, %v3224_v47  ;;  %v3232_v47 = vunpack.c.l.bf16 %v2110_v26 }
  0x70   :  { %535 = vmax.xlane.f32.xlu1 %v522_v31  ;;  %v613_v31 = vand.u32 2147483647, %v3227_v34  ;;  %v3236_v34 = vunpack.c.l.bf16 %v2118_v19 }
  0x71   :  { %533 = vmax.xlane.f32.xlu0 %v521_v30  ;;  %v612_v30 = vand.u32 2147483647, %v3228_v35  ;;  %v3235_v35 = vunpack.c.l.bf16 %v2120_v18 }
  0x74   :  { %539 = vmax.xlane.f32.xlu1 %v524_v13  ;;  %v615_v13 = vand.u32 2147483647, %v3231_v46  ;;  %v3238_v46 = vunpack.c.l.bf16 %v2128_v11 }
  0x75   :  { %537 = vmax.xlane.f32.xlu0 %v523_v12  ;;  %v614_v12 = vand.u32 2147483647, %v3232_v47  ;;  %v3237_v47 = vunpack.c.l.bf16 %v2130_v10 }
  0x76   :  { %v619_v61 = vand.u32 2147483647, %v3238_v46 }
  0x77   :  { %v618_v60 = vand.u32 2147483647, %v3237_v47 }
  0x78   :  { %622 = vmax.xlane.f32.xlu1 %v613_v31  ;;  %v617_v31 = vand.u32 2147483647, %v3236_v34 }
  0x79   :  { %620 = vmax.xlane.f32.xlu0 %v612_v30  ;;  %v616_v30 = vand.u32 2147483647, %v3235_v35 }
  0x7c   :  { %626 = vmax.xlane.f32.xlu1 %v615_v13  ;;  %v3240_v13 = vunpack.c.h.bf16 %v2098_v62 }
  0x7d   :  { %624 = vmax.xlane.f32.xlu0 %v614_v12  ;;  %v3239_v12 = vunpack.c.h.bf16 %v2100_v27 }
  0x7e   :  { %v708_v35 = vand.u32 2147483647, %v3240_v13 }
  0x7f   :  { %v707_v34 = vand.u32 2147483647, %v3239_v12 }
  0x80   :  { %630 = vmax.xlane.f32.xlu1 %v617_v31  ;;  %v3241_v31 = vunpack.c.h.bf16 %v2108_v63 }
  0x81   :  { %628 = vmax.xlane.f32.xlu0 %v616_v30  ;;  %v3245_v30 = vunpack.c.h.bf16 %v2110_v26 }
  0x82   :  { %v710_v47 = vand.u32 2147483647, %v3241_v31  ;;  %v2162_v31 = vld [vmem:[#allocation2 + $0x60] sm:$0xff]  }
  0x83   :  { %v709_v46 = vand.u32 2147483647, %v3245_v30  ;;  %v2172_v30 = vld [vmem:[#allocation2 + $0xe0] sm:$0xff]  }
  0x84   :  { %634 = vmax.xlane.f32.xlu1 %v619_v61  ;;  %v3244_v61 = vunpack.c.h.bf16 %v2120_v18  ;;  %3327 = vst [vmem:[#allocation8_spill] sm:$0xff] %v2172_v30 }
  0x85   :  { %632 = vmax.xlane.f32.xlu0 %v618_v60  ;;  %v3243_v60 = vunpack.c.h.bf16 %v2118_v19 }
  0x86   :  { %v711_v13 = vand.u32 2147483647, %v3244_v61  ;;  %v3252_v61 = vunpack.c.l.bf16 %v2164_v55 }
  0x87   :  { %v712_v12 = vand.u32 2147483647, %v3243_v60  ;;  %v3251_v60 = vunpack.c.l.bf16 %v2162_v31 }
  0x88   :  { %717 = vmax.xlane.f32.xlu1 %v708_v35  ;;  %v3248_v35 = vunpack.c.h.bf16 %v2130_v10 }
  0x89   :  { %715 = vmax.xlane.f32.xlu0 %v707_v34  ;;  %v3247_v34 = vunpack.c.h.bf16 %v2128_v11 }
  0x8c   :  { %721 = vmax.xlane.f32.xlu1 %v710_v47  ;;  %v714_v47 = vand.u32 2147483647, %v3247_v34  ;;  %v3255_v34 = vunpack.c.l.bf16 %v2172_v30 }
  0x8d   :  { %719 = vmax.xlane.f32.xlu0 %v709_v46  ;;  %v713_v46 = vand.u32 2147483647, %v3248_v35  ;;  %v3256_v35 = vunpack.c.l.bf16 %v2174_v54 }
  0x90   :  { %725 = vmax.xlane.f32.xlu1 %v712_v12  ;;  %v803_v12 = vand.u32 2147483647, %v3251_v60  ;;  %v3260_v60 = vunpack.c.l.bf16 %v2182_v49 }
  0x91   :  { %723 = vmax.xlane.f32.xlu0 %v711_v13  ;;  %v802_v13 = vand.u32 2147483647, %v3252_v61  ;;  %v3259_v61 = vunpack.c.l.bf16 %v2184_v48 }
  0x94   :  { %729 = vmax.xlane.f32.xlu1 %v714_v47  ;;  %v805_v47 = vand.u32 2147483647, %v3255_v34  ;;  %v3261_v34 = vunpack.c.l.bf16 %v2192_v43 }
  0x95   :  { %727 = vmax.xlane.f32.xlu0 %v713_v46  ;;  %v804_v46 = vand.u32 2147483647, %v3256_v35  ;;  %v3263_v35 = vunpack.c.l.bf16 %v2194_v42 }
  0x96   :  { %v809_v37 = vand.u32 2147483647, %v3261_v34 }
  0x97   :  { %v808_v36 = vand.u32 2147483647, %v3263_v35 }
  0x98   :  { %812 = vmax.xlane.f32.xlu1 %v803_v12  ;;  %v807_v12 = vand.u32 2147483647, %v3260_v60 }
  0x99   :  { %810 = vmax.xlane.f32.xlu0 %v802_v13  ;;  %v806_v13 = vand.u32 2147483647, %v3259_v61 }
  0x9c   :  { %816 = vmax.xlane.f32.xlu1 %v805_v47  ;;  %v3266_v47 = vunpack.c.h.bf16 %v2162_v31 }
  0x9d   :  { %814 = vmax.xlane.f32.xlu0 %v804_v46  ;;  %v3265_v46 = vunpack.c.h.bf16 %v2164_v55 }
  0x9e   :  { %v898_v61 = vand.u32 2147483647, %v3266_v47 }
  0x9f   :  { %v897_v60 = vand.u32 2147483647, %v3265_v46 }
  0xa0   :  { %820 = vmax.xlane.f32.xlu1 %v807_v12  ;;  %v3271_v12 = vunpack.c.h.bf16 %v2172_v30 }
  0xa1   :  { %818 = vmax.xlane.f32.xlu0 %v806_v13  ;;  %v3270_v13 = vunpack.c.h.bf16 %v2174_v54 }
  0xa4   :  { %824 = vmax.xlane.f32.xlu1 %v809_v37  ;;  %v899_v37 = vand.u32 2147483647, %v3270_v13 }
  0xa5   :  { %822 = vmax.xlane.f32.xlu0 %v808_v36  ;;  %v54_v34 = vpop.xlane.xlu1 %53  ;;  %v900_v36 = vand.u32 2147483647, %v3271_v12 }
  0xa6   :  { %v50_v33 = vpop.xlane.xlu0 %49  ;;  %v68_v35 = vmul.f32 0.002232143, %v54_v34  ;;  %v3272_v34 = vunpack.c.h.bf16 %v2184_v48 }
  0xa7   :  { %v66_v32 = vmul.f32 0.002232143, %v50_v33  ;;  %v3273_v33 = vunpack.c.h.bf16 %v2182_v49 }
  0xa8   :  { %115 = vst.msk [vmem:[%s3204_s2 + $0x10] sm:$0xff] %vm112_vm0, %v68_v35  ;;  %907 = vmax.xlane.f32.xlu1 %v898_v61  ;;  %1573 = vrcp.f32 %v68_v35  ;;  %v3277_v61 = vunpack.c.h.bf16 %v2194_v42  ;;  %v2242_v35 = vld [vmem:[#allocation2 + $0x68] sm:$0xff]   ;;  %v3333_v42 = vunpack.c.l.bf16 %v1912_v1 }
  0xa9   :  { %113 = vst.msk [vmem:[%s3204_s2] sm:$0xff] %vm112_vm0, %v66_v32  ;;  %905 = vmax.xlane.f32.xlu0 %v897_v60  ;;  %v56_v46 = vpop.xlane.xlu1 %55  ;;  %1575 = vrcp.f32 %v66_v32  ;;  %v902_v60 = vand.u32 2147483647, %v3273_v33  ;;  %v901_v32 = vand.u32 2147483647, %v3272_v34  ;;  %v2262_v33 = vld [vmem:[#allocation2 + $0xa8] sm:$0xff]  }
  0xaa   :  { %v52_v47 = vpop.xlane.xlu0 %51  ;;  %v69_v29 = vmul.f32 0.002232143, %v56_v46  ;;  %v2244_v46 = vld [vmem:[#allocation2 + $0x28] sm:$0xff]  }
  0xab   :  { %v67_v28 = vmul.f32 0.002232143, %v52_v47 }
  0xac   :  { %1577 = vrcp.f32 %v69_v29  ;;  %116 = vst.msk [vmem:[%s3204_s2 + $0x18] sm:$0xff] %vm112_vm0, %v69_v29  ;;  %911 = vmax.xlane.f32.xlu1 %v900_v36  ;;  %v3283_v36 = vunpack.c.l.bf16 %v2242_v35 }
  0xad   :  { %114 = vst.msk [vmem:[%s3204_s2 + $0x8] sm:$0xff] %vm112_vm0, %v67_v28  ;;  %909 = vmax.xlane.f32.xlu0 %v899_v37  ;;  %1579 = vrcp.f32 %v67_v28  ;;  %v60_v47 = vpop.xlane.xlu1 %59  ;;  %v904_v28 = vand.u32 2147483647, %v3278_v25  ;;  %v903_v37 = vand.u32 2147483647, %v3277_v61  ;;  %v2280_v61 = vld [vmem:[#allocation2 + $0x128] sm:$0xff]  }
  0xae   :  { %v58_v29 = vpop.xlane.xlu0 %57  ;;  %v71_v13 = vmul.f32 0.002232143, %v60_v47  ;;  %v3284_v47 = vunpack.c.l.bf16 %v2244_v46 }
  0xaf   :  { %v70_v12 = vmul.f32 0.002232143, %v58_v29  ;;  %v2260_v29 = vld [vmem:[#allocation2 + $0xe8] sm:$0xff]  }
  0xb0   :  { %1581 = vrcp.f32 %v71_v13  ;;  %118 = vst.msk [vmem:[%s3204_s2 + $0x28] sm:$0xff] %vm112_vm0, %v71_v13  ;;  %915 = vmax.xlane.f32.xlu1 %v902_v60  ;;  %v3289_v60 = vunpack.c.l.bf16 %v2260_v29 }
  0xb1   :  { %117 = vst.msk [vmem:[%s3204_s2 + $0x20] sm:$0xff] %vm112_vm0, %v70_v12  ;;  %913 = vmax.xlane.f32.xlu0 %v901_v32  ;;  %1583 = vrcp.f32 %v70_v12  ;;  %v64_v34 = vpop.xlane.xlu1 %63  ;;  %v2265_v32 = vld [vmem:[#allocation2 + $0x168] sm:$0xff]   ;;  %v993_v12 = vand.u32 2147483647, %v3283_v36 }
  0xb2   :  { %v62_v13 = vpop.xlane.xlu0 %61  ;;  %v73_v24 = vmul.f32 0.002232143, %v64_v34  ;;  %v1574_v20 = vpop.eup %1573  ;;  %v992_v34 = vand.u32 2147483647, %v3284_v47  ;;  %v3336_v48 = vunpack.c.l.bf16 %v2265_v32 }
  0xb3   :  { %v72_v21 = vmul.f32 0.002232143, %v62_v13  ;;  %v1576_v25 = vpop.eup %1575  ;;  %v79_v36 = vmul.f32 %v1574_v20, %v35_v3  ;;  %v995_v13 = vand.u32 2147483647, %v3289_v60  ;;  %v3335_v3 = vunpack.c.l.bf16 %v2262_v33 }
  0xb4   :  { %1585 = vrcp.f32 %v73_v24  ;;  %120 = vst.msk [vmem:[%s3204_s2 + $0x38] sm:$0xff] %vm112_vm0, %v73_v24  ;;  %919 = vmax.xlane.f32.xlu1 %v904_v28  ;;  %v75_v43 = vmul.f32 %v1576_v25, %v3333_v42  ;;  %v2304_v42 = vld [vmem:[#allocation2 + $0x1e8] sm:$0xff]  }
  0xb5   :  { %119 = vst.msk [vmem:[%s3204_s2 + $0x30] sm:$0xff] %vm112_vm0, %v72_v21  ;;  %917 = vmax.xlane.f32.xlu0 %v903_v37  ;;  %1587 = vrcp.f32 %v72_v21  ;;  %v148_v24 = vpop.xlane.xlu1 %147 }
  0xb6   :  { %v146_v15 = vpop.xlane.xlu0 %145  ;;  %v1578_v14 = vpop.eup %1577  ;;  %v162_v7 = vmul.f32 0.002232143, %v148_v24  ;;  %v3334_v24 = vunpack.c.l.bf16 %v1919_v6 }
  0xb7   :  { %v161_v4 = vmul.f32 0.002232143, %v146_v15  ;;  %v1580_v37 = vpop.eup %1579  ;;  %v81_v47 = vmul.f32 %v1578_v14, %v36_v5  ;;  %v994_v5 = vand.u32 2147483647, %v3335_v3 }
  0xb8   :  { %v77_v15 = vmul.f32 %v1580_v37, %v3334_v24  ;;  %1589 = vrcp.f32 %v162_v7  ;;  %209 = vst.msk [vmem:[%s3204_s2 + $0x8] sm:$0xff] %vm207_vm1, %v162_v7  ;;  %1002 = vmax.xlane.f32.xlu1 %v993_v12  ;;  %v2306_v37 = vld [vmem:[#allocation2 + $0x1a8] sm:$0xff]   ;;  %v997_v12 = vand.u32 2147483647, %v3336_v48 }
  0xb9   :  { %208 = vst.msk [vmem:[%s3204_s2] sm:$0xff] %vm207_vm1, %v161_v4  ;;  %1000 = vmax.xlane.f32.xlu0 %v992_v34  ;;  %v94_v14 = vpack.c.f32.eXmY %v79_v36, %v81_v47, 61788  ;;  %1591 = vrcp.f32 %v161_v4  ;;  %v152_v20 = vpop.xlane.xlu1 %151  ;;  %v3337_v34 = vunpack.c.l.bf16 %v2280_v61  ;;  %v3298_v4 = vunpack.c.h.bf16 %v2242_v35 }
  0xba   :  { %v150_v25 = vpop.xlane.xlu0 %149  ;;  %v1582_v24 = vpop.eup %1581  ;;  %v90_v7 = vpack.c.f32.eXmY %v75_v43, %v77_v15, 61788  ;;  %v164_v60 = vmul.f32 0.002232143, %v152_v20  ;;  %v3338_v15 = vunpack.c.l.bf16 %v1922_v8  ;;  %v3341_v43 = vunpack.c.l.bf16 %v1938_v17 }
  0xbb   :  { %v163_v21 = vmul.f32 0.002232143, %v150_v25  ;;  %v1584_v28 = vpop.eup %1583  ;;  %v996_v49 = vand.u32 2147483647, %v3337_v34 }
  0xbc   :  { %v98_v3 = vpack.c.b8 %v94_v14, %v90_v7  ;;  %1593 = vrcp.f32 %v164_v60  ;;  %211 = vst.msk [vmem:[%s3204_s2 + $0x18] sm:$0xff] %vm207_vm1, %v164_v60  ;;  %1006 = vmax.xlane.f32.xlu1 %v995_v13  ;;  %v85_v14 = vmul.f32 %v1582_v24, %v3338_v15  ;;  %v3339_v60 = vunpack.c.l.bf16 %v1924_v9 }
  0xbd   :  { %210 = vst.msk [vmem:[%s3204_s2 + $0x10] sm:$0xff] %vm207_vm1, %v163_v21  ;;  %1004 = vmax.xlane.f32.xlu0 %v994_v5  ;;  %1595 = vrcp.f32 %v163_v21  ;;  %v156_v48 = vpop.xlane.xlu1 %155  ;;  %v3340_v13 = vunpack.c.l.bf16 %v1936_v16  ;;  %v1088_v21 = vand.u32 2147483647, %v3298_v4  ;;  %v3348_v4 = vunpack.c.h.bf16 %v1910_v0 }
  0xbe   :  { %v154_v36 = vpop.xlane.xlu0 %153  ;;  %v1586_v47 = vpop.eup %1585  ;;  %110 = vst [vmem:[#allocation5] sm:$0xff] %v98_v3  ;;  %v83_v20 = vmul.f32 %v1584_v28, %v3339_v60  ;;  %v166_v25 = vmul.f32 0.002232143, %v156_v48  ;;  %v3342_v28 = vunpack.c.l.bf16 %v2304_v42  ;;  %v3343_v3 = vunpack.c.l.bf16 %v2306_v37 }
  0xbf   :  { %v165_v7 = vmul.f32 0.002232143, %v154_v36  ;;  %v1588_v34 = vpop.eup %1587  ;;  %v89_v5 = vmul.f32 %v1586_v47, %v3340_v13 }
  0xc0   :  { %v87_v54 = vmul.f32 %v1588_v34, %v3341_v43  ;;  %1597 = vrcp.f32 %v166_v25  ;;  %213 = vst.msk [vmem:[%s3204_s2 + $0x28] sm:$0xff] %vm207_vm1, %v166_v25  ;;  %1010 = vmax.xlane.f32.xlu1 %v997_v12  ;;  %v999_v24 = vand.u32 2147483647, %v3342_v28  ;;  %v998_v48 = vand.u32 2147483647, %v3343_v3 }
  0xc1   :  { %212 = vst.msk [vmem:[%s3204_s2 + $0x20] sm:$0xff] %vm207_vm1, %v165_v7  ;;  %1008 = vmax.xlane.f32.xlu0 %v996_v49  ;;  %1599 = vrcp.f32 %v165_v7  ;;  %v160_v43 = vpop.xlane.xlu1 %159  ;;  %v100_v15 = vpack.c.f32.eXmY %v83_v20, %v85_v14, 61788  ;;  %v3344_v49 = vunpack.c.h.bf16 %v2244_v46  ;;  %v3345_v28 = vunpack.c.h.bf16 %v1919_v6 }
  0xc2   :  { %v158_v36 = vpop.xlane.xlu0 %157  ;;  %v1590_v47 = vpop.eup %1589  ;;  %v104_v60 = vpack.c.f32.eXmY %v87_v54, %v89_v5, 61788  ;;  %v168_v25 = vmul.f32 0.002232143, %v160_v43  ;;  %v3309_v54 = vunpack.c.h.bf16 %v2260_v29  ;;  %v3346_v43 = vunpack.c.h.bf16 %v1912_v1 }
  0xc3   :  { %v167_v34 = vmul.f32 0.002232143, %v158_v36  ;;  %v1592_v13 = vpop.eup %1591  ;;  %v1087_v12 = vand.u32 2147483647, %v3344_v49  ;;  %v172_v3 = vmul.f32 %v1590_v47, %v3345_v28  ;;  %v3300_v49 = vunpack.c.h.bf16 %v2265_v32 }
  0xc4   :  { %v108_v30 = vpack.c.b8 %v104_v60, %v100_v15  ;;  %1601 = vrcp.f32 %v168_v25  ;;  %215 = vst.msk [vmem:[%s3204_s2 + $0x38] sm:$0xff] %vm207_vm1, %v168_v25  ;;  %1014 = vmax.xlane.f32.xlu1 %v999_v24  ;;  %v170_v36 = vmul.f32 %v1592_v13, %v3346_v43  ;;  %v1090_v1 = vand.u32 2147483647, %v3309_v54  ;;  %v2394_v43 = vld [vmem:[#allocation2 + $0x70] sm:$0xff]  }
  0xc5   :  { %214 = vst.msk [vmem:[%s3204_s2 + $0x30] sm:$0xff] %vm207_vm1, %v167_v34  ;;  %1012 = vmax.xlane.f32.xlu0 %v998_v48  ;;  %1603 = vrcp.f32 %v167_v34  ;;  %v243_v20 = vpop.xlane.xlu1 %242  ;;  %v3347_v48 = vunpack.c.h.bf16 %v1914_v2  ;;  %v3299_v34 = vunpack.c.h.bf16 %v2280_v61  ;;  %v3349_v2 = vunpack.c.h.bf16 %v2262_v33 }
  0xc6   :  { %v241_v7 = vpop.xlane.xlu0 %240  ;;  %v1594_v5 = vpop.eup %1593  ;;  %111 = vst [vmem:[#allocation5 + $0x80] sm:$0xff] %v108_v30  ;;  %v257_v15 = vmul.f32 0.002232143, %v243_v20  ;;  %v185_v47 = vpack.c.f32.eXmY %v170_v36, %v172_v3, 61788  ;;  %v1092_v28 = vand.u32 2147483647, %v3300_v49  ;;  %v3303_v3 = vunpack.c.h.bf16 %v2306_v37 }
  0xc7   :  { %v256_v60 = vmul.f32 0.002232143, %v241_v7  ;;  %v1596_v24 = vpop.eup %1595  ;;  %v176_v25 = vmul.f32 %v1594_v5, %v3347_v48  ;;  %v1089_v0 = vand.u32 2147483647, %v3349_v2  ;;  %v2396_v36 = vld [vmem:[#allocation2 + $0x30] sm:$0xff]   ;;  %v3350_v48 = vunpack.c.h.bf16 %v1922_v8 }
  0xc8   :  { %v174_v14 = vmul.f32 %v1596_v24, %v3348_v4  ;;  %1605 = vrcp.f32 %v257_v15  ;;  %304 = vst.msk [vmem:[%s3204_s2 + $0x8] sm:$0xff] %vm302_vm2, %v257_v15  ;;  %1097 = vmax.xlane.f32.xlu1 %v1088_v21  ;;  %v1091_v21 = vand.u32 2147483647, %v3299_v34  ;;  %v3351_v2 = vunpack.c.h.bf16 %v1924_v9 }
  0xc9   :  { %303 = vst.msk [vmem:[%s3204_s2] sm:$0xff] %vm302_vm2, %v256_v60  ;;  %1095 = vmax.xlane.f32.xlu0 %v1087_v12  ;;  %1607 = vrcp.f32 %v256_v60  ;;  %v247_v6 = vpop.xlane.xlu1 %246  ;;  %v3353_v34 = vunpack.c.h.bf16 %v1938_v17  ;;  %v1093_v9 = vand.u32 2147483647, %v3303_v3  ;;  %v3357_v3 = vunpack.c.l.bf16 %v1982_v45 }
  0xca   :  { %v245_v30 = vpop.xlane.xlu0 %244  ;;  %v1598_v4 = vpop.eup %1597  ;;  %v189_v13 = vpack.c.f32.eXmY %v174_v14, %v176_v25, 61788  ;;  %v259_v20 = vmul.f32 0.002232143, %v247_v6  ;;  %v3304_v14 = vunpack.c.h.bf16 %v2304_v42  ;;  %v3361_v54 = vunpack.c.l.bf16 %v2002_v57 }
  0xcb   :  { %v258_v7 = vmul.f32 0.002232143, %v245_v30  ;;  %v1600_v5 = vpop.eup %1599  ;;  %v180_v25 = vmul.f32 %v1598_v4, %v3350_v48  ;;  %v2422_v4 = vld [vmem:[#allocation2 + $0xb0] sm:$0xff]  }
  0xcc   :  { %v193_v12 = vpack.c.b8 %v189_v13, %v185_v47  ;;  %1609 = vrcp.f32 %v259_v20  ;;  %306 = vst.msk [vmem:[%s3204_s2 + $0x18] sm:$0xff] %vm302_vm2, %v259_v20  ;;  %1101 = vmax.xlane.f32.xlu1 %v1090_v1  ;;  %v178_v1 = vmul.f32 %v1600_v5, %v3351_v2  ;;  %v3352_v47 = vunpack.c.h.bf16 %v1936_v16 }
  0xcd   :  { %305 = vst.msk [vmem:[%s3204_s2 + $0x10] sm:$0xff] %vm302_vm2, %v258_v7  ;;  %1099 = vmax.xlane.f32.xlu0 %v1089_v0  ;;  %1611 = vrcp.f32 %v258_v7  ;;  %v251_v15 = vpop.xlane.xlu1 %250  ;;  %v3302_v20 = vunpack.c.l.bf16 %v2394_v43  ;;  %v3301_v7 = vunpack.c.l.bf16 %v2396_v36  ;;  %v1094_v8 = vand.u32 2147483647, %v3304_v14 }
  0xce   :  { %v249_v60 = vpop.xlane.xlu0 %248  ;;  %v1602_v24 = vpop.eup %1601  ;;  %205 = vst [vmem:[#allocation5 + $0x8] sm:$0xff] %v193_v12  ;;  %v261_v0 = vmul.f32 0.002232143, %v251_v15  ;;  %v195_v12 = vpack.c.f32.eXmY %v178_v1, %v180_v25, 61788  ;;  %v3305_v25 = vunpack.c.l.bf16 %v2422_v4  ;;  %v2438_v1 = vld [vmem:[#allocation2 + $0x170] sm:$0xff]  }
  0xcf   :  { %v260_v6 = vmul.f32 0.002232143, %v249_v60  ;;  %v1604_v30 = vpop.eup %1603  ;;  %v184_v13 = vmul.f32 %v1602_v24, %v3352_v47  ;;  %v1182_v48 = vand.u32 2147483647, %v3301_v7 }
  0xd0   :  { %v182_v49 = vmul.f32 %v1604_v30, %v3353_v34  ;;  %1613 = vrcp.f32 %v261_v0  ;;  %308 = vst.msk [vmem:[%s3204_s2 + $0x28] sm:$0xff] %vm302_vm2, %v261_v0  ;;  %1105 = vmax.xlane.f32.xlu1 %v1092_v28  ;;  %v2420_v34 = vld [vmem:[#allocation2 + $0xf0] sm:$0xff]  }
  0xd1   :  { %307 = vst.msk [vmem:[%s3204_s2 + $0x20] sm:$0xff] %vm302_vm2, %v260_v6  ;;  %1103 = vmax.xlane.f32.xlu0 %v1091_v21  ;;  %1615 = vrcp.f32 %v260_v6  ;;  %v255_v16 = vpop.xlane.xlu1 %254  ;;  %v1183_v21 = vand.u32 2147483647, %v3302_v20  ;;  %v2440_v0 = vld [vmem:[#allocation2 + $0x130] sm:$0xff]   ;;  %v3307_v20 = vunpack.c.l.bf16 %v2438_v1 }
  0xd2   :  { %v253_v17 = vpop.xlane.xlu0 %252  ;;  %v1606_v5 = vpop.eup %1605  ;;  %v199_v15 = vpack.c.f32.eXmY %v182_v49, %v184_v13, 61788  ;;  %v263_v60 = vmul.f32 0.002232143, %v255_v16  ;;  %v3308_v49 = vunpack.c.l.bf16 %v2420_v34  ;;  %v3354_v13 = vunpack.c.l.bf16 %v1970_v38 }
  0xd3   :  { %v262_v24 = vmul.f32 0.002232143, %v253_v17  ;;  %v1608_v28 = vpop.eup %1607 }
  0xd4   :  { %v203_v2 = vpack.c.b8 %v199_v15, %v195_v12  ;;  %1617 = vrcp.f32 %v263_v60  ;;  %310 = vst.msk [vmem:[%s3204_s2 + $0x38] sm:$0xff] %vm302_vm2, %v263_v60  ;;  %1109 = vmax.xlane.f32.xlu1 %v1094_v8  ;;  %v267_v16 = vmul.f32 %v1606_v5, %v3354_v13  ;;  %v3355_v8 = vunpack.c.l.bf16 %v1972_v39 }
  0xd5   :  { %309 = vst.msk [vmem:[%s3204_s2 + $0x30] sm:$0xff] %vm302_vm2, %v262_v24  ;;  %1107 = vmax.xlane.f32.xlu0 %v1093_v9  ;;  %1619 = vrcp.f32 %v262_v24  ;;  %v338_v6 = vpop.xlane.xlu1 %337  ;;  %v3356_v60 = vunpack.c.l.bf16 %v1980_v44  ;;  %v3306_v24 = vunpack.c.l.bf16 %v2440_v0  ;;  %v1185_v5 = vand.u32 2147483647, %v3308_v49 }
  0xd6   :  { %v336_v30 = vpop.xlane.xlu0 %335  ;;  %v1610_v47 = vpop.eup %1609  ;;  %206 = vst [vmem:[#allocation5 + $0x88] sm:$0xff] %v203_v2  ;;  %v265_v9 = vmul.f32 %v1608_v28, %v3355_v8  ;;  %v352_v17 = vmul.f32 0.002232143, %v338_v6  ;;  %v1184_v28 = vand.u32 2147483647, %v3305_v25  ;;  %v2464_v6 = vld [vmem:[#allocation2 + $0x1f0] sm:$0xff]   ;;  %v3311_v49 = vunpack.c.h.bf16 %v2394_v43 }
  0xd7   :  { %v351_v12 = vmul.f32 0.002232143, %v336_v30  ;;  %v1612_v15 = vpop.eup %1611  ;;  %v271_v7 = vmul.f32 %v1610_v47, %v3356_v60  ;;  %v2466_v30 = vld [vmem:[#allocation2 + $0x1b0] sm:$0xff]   ;;  %v1186_v60 = vand.u32 2147483647, %v3306_v24 }
  0xd8   :  { %v269_v14 = vmul.f32 %v1612_v15, %v3357_v3  ;;  %1621 = vrcp.f32 %v352_v17  ;;  %399 = vst.msk [vmem:[%s3204_s2 + $0x8] sm:$0xff] %vm397_vm3, %v352_v17  ;;  %1192 = vmax.xlane.f32.xlu1 %v1183_v21  ;;  %v280_v13 = vpack.c.f32.eXmY %v265_v9, %v267_v16, 61788 }
  0xd9   :  { %398 = vst.msk [vmem:[%s3204_s2] sm:$0xff] %vm397_vm3, %v351_v12  ;;  %1190 = vmax.xlane.f32.xlu0 %v1182_v48  ;;  %1623 = vrcp.f32 %v351_v12  ;;  %v342_v3 = vpop.xlane.xlu1 %341  ;;  %v1187_v48 = vand.u32 2147483647, %v3307_v20 }
  0xda   :  { %v340_v2 = vpop.xlane.xlu0 %339  ;;  %v1614_v47 = vpop.eup %1613  ;;  %v284_v8 = vpack.c.f32.eXmY %v269_v14, %v271_v7, 61788  ;;  %v354_v17 = vmul.f32 0.002232143, %v342_v3  ;;  %v3312_v14 = vunpack.c.l.bf16 %v2464_v6  ;;  %v3358_v3 = vunpack.c.l.bf16 %v1990_v50 }
  0xdb   :  { %v353_v15 = vmul.f32 0.002232143, %v340_v2  ;;  %v1616_v21 = vpop.eup %1615 }
  0xdc   :  { %v288_v25 = vpack.c.b8 %v284_v8, %v280_v13  ;;  %1625 = vrcp.f32 %v354_v17  ;;  %401 = vst.msk [vmem:[%s3204_s2 + $0x18] sm:$0xff] %vm397_vm3, %v354_v17  ;;  %1196 = vmax.xlane.f32.xlu1 %v1185_v5  ;;  %v275_v2 = vmul.f32 %v1614_v47, %v3358_v3  ;;  %v3359_v13 = vunpack.c.l.bf16 %v1992_v51 }
  0xdd   :  { %400 = vst.msk [vmem:[%s3204_s2 + $0x10] sm:$0xff] %vm397_vm3, %v353_v15  ;;  %1194 = vmax.xlane.f32.xlu0 %v1184_v28  ;;  %1627 = vrcp.f32 %v353_v15  ;;  %v346_v16 = vpop.xlane.xlu1 %345  ;;  %v3360_v5 = vunpack.c.l.bf16 %v2000_v56  ;;  %v3310_v15 = vunpack.c.h.bf16 %v2396_v36  ;;  %v3362_v47 = vunpack.c.l.bf16 %v2466_v30 }
  0xde   :  { %v344_v9 = vpop.xlane.xlu0 %343  ;;  %v1618_v12 = vpop.eup %1617  ;;  %300 = vst [vmem:[#allocation5 + $0x10] sm:$0xff] %v288_v25  ;;  %v273_v8 = vmul.f32 %v1616_v21, %v3359_v13  ;;  %v356_v17 = vmul.f32 0.002232143, %v346_v16  ;;  %v1189_v25 = vand.u32 2147483647, %v3312_v14  ;;  %v3366_v14 = vunpack.c.h.bf16 %v1982_v45 }
  0xdf   :  { %v355_v24 = vmul.f32 0.002232143, %v344_v9  ;;  %v1620_v20 = vpop.eup %1619  ;;  %v279_v28 = vmul.f32 %v1618_v12, %v3360_v5  ;;  %v1188_v21 = vand.u32 2147483647, %v3362_v47  ;;  %v1278_v5 = vand.u32 2147483647, %v3311_v49 }
  0xe0   :  { %v277_v7 = vmul.f32 %v1620_v20, %v3361_v54  ;;  %1629 = vrcp.f32 %v356_v17  ;;  %403 = vst.msk [vmem:[%s3204_s2 + $0x28] sm:$0xff] %vm397_vm3, %v356_v17  ;;  %1200 = vmax.xlane.f32.xlu1 %v1187_v48  ;;  %v290_v9 = vpack.c.f32.eXmY %v273_v8, %v275_v2, 61788  ;;  %v1277_v48 = vand.u32 2147483647, %v3310_v15 }
  0xe1   :  { %402 = vst.msk [vmem:[%s3204_s2 + $0x20] sm:$0xff] %vm397_vm3, %v355_v24  ;;  %1198 = vmax.xlane.f32.xlu0 %v1186_v60  ;;  %1631 = vrcp.f32 %v355_v24  ;;  %v350_v54 = vpop.xlane.xlu1 %349  ;;  %v3323_v24 = vunpack.c.h.bf16 %v2420_v34  ;;  %v3363_v47 = vunpack.c.h.bf16 %v1970_v38  ;;  %v3314_v49 = vunpack.c.h.bf16 %v2438_v1 }
  0xe2   :  { %v348_v20 = vpop.xlane.xlu0 %347  ;;  %v1622_v16 = vpop.eup %1621  ;;  %v294_v12 = vpack.c.f32.eXmY %v277_v7, %v279_v28, 61788  ;;  %v358_v3 = vmul.f32 0.002232143, %v350_v54 }
  0xe3   :  { %v357_v13 = vmul.f32 0.002232143, %v348_v20  ;;  %v1624_v17 = vpop.eup %1623  ;;  %v362_v54 = vmul.f32 %v1622_v16, %v3363_v47  ;;  %v3364_v20 = vunpack.c.h.bf16 %v1972_v39  ;;  %v1280_v38 = vand.u32 2147483647, %v3323_v24 }
  0xe4   :  { %v298_v60 = vpack.c.b8 %v294_v12, %v290_v9  ;;  %1633 = vrcp.f32 %v358_v3  ;;  %405 = vst.msk [vmem:[%s3204_s2 + $0x38] sm:$0xff] %vm397_vm3, %v358_v3  ;;  %1204 = vmax.xlane.f32.xlu1 %v1189_v25  ;;  %v3367_v39 = vunpack.c.h.bf16 %v2422_v4  ;;  %v1282_v47 = vand.u32 2147483647, %v3314_v49 }
  0xe5   :  { %404 = vst.msk [vmem:[%s3204_s2 + $0x30] sm:$0xff] %vm397_vm3, %v357_v13  ;;  %1202 = vmax.xlane.f32.xlu0 %v1188_v21  ;;  %1635 = vrcp.f32 %v357_v13  ;;  %v433_v2 = vpop.xlane.xlu1 %432  ;;  %v360_v9 = vmul.f32 %v1624_v17, %v3364_v20  ;;  %v3365_v21 = vunpack.c.h.bf16 %v1980_v44  ;;  %v3313_v13 = vunpack.c.h.bf16 %v2440_v0  ;;  %v2556_v20 = vld [vmem:[#allocation2 + $0x38] sm:$0xff]  }
  0xe6   :  { %v431_v8 = vpop.xlane.xlu0 %430  ;;  %v1626_v28 = vpop.eup %1625  ;;  %301 = vst [vmem:[#allocation5 + $0x90] sm:$0xff] %v298_v60  ;;  %v447_v12 = vmul.f32 0.002232143, %v433_v2  ;;  %v1279_v44 = vand.u32 2147483647, %v3367_v39  ;;  %v3369_v39 = vunpack.c.h.bf16 %v1992_v51  ;;  %v3379_v24 = vunpack.c.l.bf16 %v2066_v52 }
  0xe7   :  { %v446_v3 = vmul.f32 0.002232143, %v431_v8  ;;  %v1628_v25 = vpop.eup %1627  ;;  %v366_v15 = vmul.f32 %v1626_v28, %v3365_v21  ;;  %v375_v17 = vpack.c.f32.eXmY %v360_v9, %v362_v54, 61788  ;;  %v2554_v54 = vld [vmem:[#allocation2 + $0x78] sm:$0xff]  }
  0xe8   :  { %v364_v7 = vmul.f32 %v1628_v25, %v3366_v14  ;;  %1637 = vrcp.f32 %v447_v12  ;;  %494 = vst.msk [vmem:[%s3204_s2 + $0x8] sm:$0xff] %vm492_vm4, %v447_v12  ;;  %1287 = vmax.xlane.f32.xlu1 %v1278_v5  ;;  %v1281_v5 = vand.u32 2147483647, %v3313_v13  ;;  %v3368_v25 = vunpack.c.h.bf16 %v1990_v50 }
  0xe9   :  { %493 = vst.msk [vmem:[%s3204_s2] sm:$0xff] %vm492_vm4, %v446_v3  ;;  %1285 = vmax.xlane.f32.xlu0 %v1277_v48  ;;  %1639 = vrcp.f32 %v446_v3  ;;  %v437_v45 = vpop.xlane.xlu1 %436  ;;  %v3371_v13 = vunpack.c.h.bf16 %v2002_v57 }
  0xea   :  { %v435_v14 = vpop.xlane.xlu0 %434  ;;  %v1630_v16 = vpop.eup %1629  ;;  %v379_v60 = vpack.c.f32.eXmY %v364_v7, %v366_v15, 61788  ;;  %v449_v2 = vmul.f32 0.002232143, %v437_v45  ;;  %v3318_v15 = vunpack.c.h.bf16 %v2464_v6  ;;  %v3317_v7 = vunpack.c.h.bf16 %v2466_v30 }
  0xeb   :  { %v448_v8 = vmul.f32 0.002232143, %v435_v14  ;;  %v1632_v28 = vpop.eup %1631  ;;  %v370_v21 = vmul.f32 %v1630_v16, %v3368_v25  ;;  %v2582_v16 = vld [vmem:[#allocation2 + $0xb8] sm:$0xff]  }
  0xec   :  { %v383_v48 = vpack.c.b8 %v379_v60, %v375_v17  ;;  %1641 = vrcp.f32 %v449_v2  ;;  %496 = vst.msk [vmem:[%s3204_s2 + $0x18] sm:$0xff] %vm492_vm4, %v449_v2  ;;  %1291 = vmax.xlane.f32.xlu1 %v1280_v38  ;;  %v368_v38 = vmul.f32 %v1632_v28, %v3369_v39  ;;  %v3370_v17 = vunpack.c.h.bf16 %v2000_v56 }
  0xed   :  { %495 = vst.msk [vmem:[%s3204_s2 + $0x10] sm:$0xff] %vm492_vm4, %v448_v8  ;;  %1289 = vmax.xlane.f32.xlu0 %v1279_v44  ;;  %1643 = vrcp.f32 %v448_v8  ;;  %v441_v9 = vpop.xlane.xlu1 %440  ;;  %v3316_v2 = vunpack.c.l.bf16 %v2554_v54  ;;  %v3315_v8 = vunpack.c.l.bf16 %v2556_v20  ;;  %v1284_v50 = vand.u32 2147483647, %v3318_v15 }
  0xee   :  { %v439_v12 = vpop.xlane.xlu0 %438  ;;  %v1634_v3 = vpop.eup %1633  ;;  %395 = vst [vmem:[#allocation5 + $0x18] sm:$0xff] %v383_v48  ;;  %v451_v44 = vmul.f32 0.002232143, %v441_v9  ;;  %v1283_v51 = vand.u32 2147483647, %v3317_v7  ;;  %v385_v48 = vpack.c.f32.eXmY %v368_v38, %v370_v21, 61788  ;;  %v3319_v21 = vunpack.c.l.bf16 %v2582_v16 }
  0xef   :  { %v450_v45 = vmul.f32 0.002232143, %v439_v12  ;;  %v1636_v14 = vpop.eup %1635  ;;  %v374_v60 = vmul.f32 %v1634_v3, %v3370_v17  ;;  %v1372_v25 = vand.u32 2147483647, %v3315_v8  ;;  %v2598_v38 = vld [vmem:[#allocation2 + $0x178] sm:$0xff]   ;;  %v3375_v7 = vunpack.c.l.bf16 %v2046_v59 }
  0xf0   :  { %v372_v49 = vmul.f32 %v1636_v14, %v3371_v13  ;;  %1645 = vrcp.f32 %v451_v44  ;;  %498 = vst.msk [vmem:[%s3204_s2 + $0x28] sm:$0xff] %vm492_vm4, %v451_v44  ;;  %1295 = vmax.xlane.f32.xlu1 %v1282_v47  ;;  %v2580_v13 = vld [vmem:[#allocation2 + $0xf8] sm:$0xff]  }
  0xf1   :  { %497 = vst.msk [vmem:[%s3204_s2 + $0x20] sm:$0xff] %vm492_vm4, %v450_v45  ;;  %1293 = vmax.xlane.f32.xlu0 %v1281_v5  ;;  %1647 = vrcp.f32 %v450_v45  ;;  %v445_v56 = vpop.xlane.xlu1 %444  ;;  %v1373_v5 = vand.u32 2147483647, %v3316_v2  ;;  %v2600_v44 = vld [vmem:[#allocation2 + $0x138] sm:$0xff]   ;;  %v3321_v2 = vunpack.c.l.bf16 %v2598_v38 }
  0xf2   :  { %v443_v57 = vpop.xlane.xlu0 %442  ;;  %v1638_v28 = vpop.eup %1637  ;;  %v389_v9 = vpack.c.f32.eXmY %v372_v49, %v374_v60, 61788  ;;  %v453_v12 = vmul.f32 0.002232143, %v445_v56  ;;  %v3322_v49 = vunpack.c.l.bf16 %v2580_v13  ;;  %v3372_v60 = vunpack.c.l.bf16 %v2034_v40 }
  0xf3   :  { %v452_v3 = vmul.f32 0.002232143, %v443_v57  ;;  %v1640_v47 = vpop.eup %1639 }
  0xf4   :  { %v393_v39 = vpack.c.b8 %v389_v9, %v385_v48  ;;  %1649 = vrcp.f32 %v453_v12  ;;  %500 = vst.msk [vmem:[%s3204_s2 + $0x38] sm:$0xff] %vm492_vm4, %v453_v12  ;;  %1299 = vmax.xlane.f32.xlu1 %v1284_v50  ;;  %v457_v56 = vmul.f32 %v1638_v28, %v3372_v60  ;;  %v3373_v50 = vunpack.c.l.bf16 %v2036_v41 }
  0xf5   :  { %499 = vst.msk [vmem:[%s3204_s2 + $0x30] sm:$0xff] %vm492_vm4, %v452_v3  ;;  %1297 = vmax.xlane.f32.xlu0 %v1283_v51  ;;  %1651 = vrcp.f32 %v452_v3  ;;  %v528_v45 = vpop.xlane.xlu1 %527  ;;  %v3374_v12 = vunpack.c.l.bf16 %v2044_v58  ;;  %v3320_v3 = vunpack.c.l.bf16 %v2600_v44  ;;  %v1375_v28 = vand.u32 2147483647, %v3322_v49 }
  0xf6   :  { %v526_v14 = vpop.xlane.xlu0 %525  ;;  %v1642_v17 = vpop.eup %1641  ;;  %396 = vst [vmem:[#allocation5 + $0x98] sm:$0xff] %v393_v39  ;;  %v455_v51 = vmul.f32 %v1640_v47, %v3373_v50  ;;  %v542_v57 = vmul.f32 0.002232143, %v528_v45  ;;  %v1374_v47 = vand.u32 2147483647, %v3319_v21  ;;  %v2624_v45 = vld [vmem:[#allocation2 + $0x1f8] sm:$0xff]   ;;  %v3325_v49 = vunpack.c.h.bf16 %v2554_v54 }
  0xf7   :  { %v541_v48 = vmul.f32 0.002232143, %v526_v14  ;;  %v1644_v9 = vpop.eup %1643  ;;  %v461_v8 = vmul.f32 %v1642_v17, %v3374_v12  ;;  %v2626_v14 = vld [vmem:[#allocation2 + $0x1b8] sm:$0xff]   ;;  %v1376_v12 = vand.u32 2147483647, %v3320_v3 }
  0xf8   :  { %v459_v15 = vmul.f32 %v1644_v9, %v3375_v7  ;;  %1653 = vrcp.f32 %v542_v57  ;;  %589 = vst.msk [vmem:[%s3204_s2 + $0x8] sm:$0xff] %vm587_vm5, %v542_v57  ;;  %1382 = vmax.xlane.f32.xlu1 %v1373_v5  ;;  %v470_v60 = vpack.c.f32.eXmY %v455_v51, %v457_v56, 61788 }
  0xf9   :  { %588 = vst.msk [vmem:[%s3204_s2] sm:$0xff] %vm587_vm5, %v541_v48  ;;  %1380 = vmax.xlane.f32.xlu0 %v1372_v25  ;;  %1655 = vrcp.f32 %v541_v48  ;;  %v532_v7 = vpop.xlane.xlu1 %531  ;;  %v1377_v25 = vand.u32 2147483647, %v3321_v2 }
  0xfa   :  { %v530_v39 = vpop.xlane.xlu0 %529  ;;  %v1646_v17 = vpop.eup %1645  ;;  %v474_v50 = vpack.c.f32.eXmY %v459_v15, %v461_v8, 61788  ;;  %v544_v57 = vmul.f32 0.002232143, %v532_v7  ;;  %v3326_v15 = vunpack.c.l.bf16 %v2624_v45  ;;  %v3376_v7 = vunpack.c.l.bf16 %v2054_v22 }
  0xfb   :  { %v543_v9 = vmul.f32 0.002232143, %v530_v39  ;;  %v1648_v5 = vpop.eup %1647 }
  0xfc   :  { %v478_v21 = vpack.c.b8 %v474_v50, %v470_v60  ;;  %1657 = vrcp.f32 %v544_v57  ;;  %591 = vst.msk [vmem:[%s3204_s2 + $0x18] sm:$0xff] %vm587_vm5, %v544_v57  ;;  %1386 = vmax.xlane.f32.xlu1 %v1375_v28  ;;  %v465_v39 = vmul.f32 %v1646_v17, %v3376_v7  ;;  %v3377_v60 = vunpack.c.l.bf16 %v2056_v23 }
  0xfd   :  { %590 = vst.msk [vmem:[%s3204_s2 + $0x10] sm:$0xff] %vm587_vm5, %v543_v9  ;;  %1384 = vmax.xlane.f32.xlu0 %v1374_v47  ;;  %1659 = vrcp.f32 %v543_v9  ;;  %v536_v56 = vpop.xlane.xlu1 %535  ;;  %v3378_v28 = vunpack.c.l.bf16 %v2064_v53  ;;  %v3324_v9 = vunpack.c.h.bf16 %v2556_v20  ;;  %v3380_v17 = vunpack.c.l.bf16 %v2626_v14 }
  0xfe   :  { %v534_v51 = vpop.xlane.xlu0 %533  ;;  %v1650_v48 = vpop.eup %1649  ;;  %490 = vst [vmem:[#allocation5 + $0x20] sm:$0xff] %v478_v21  ;;  %v463_v50 = vmul.f32 %v1648_v5, %v3377_v60  ;;  %v546_v57 = vmul.f32 0.002232143, %v536_v56  ;;  %v1379_v21 = vand.u32 2147483647, %v3326_v15  ;;  %v3384_v15 = vunpack.c.h.bf16 %v2046_v59 }
  0xff   :  { %v545_v3 = vmul.f32 0.002232143, %v534_v51  ;;  %v1652_v2 = vpop.eup %1651  ;;  %v469_v47 = vmul.f32 %v1650_v48, %v3378_v28  ;;  %v1378_v5 = vand.u32 2147483647, %v3380_v17  ;;  %v1468_v28 = vand.u32 2147483647, %v3325_v49 }
 0x100   :  { %v467_v8 = vmul.f32 %v1652_v2, %v3379_v24  ;;  %1661 = vrcp.f32 %v546_v57  ;;  %593 = vst.msk [vmem:[%s3204_s2 + $0x28] sm:$0xff] %vm587_vm5, %v546_v57  ;;  %1390 = vmax.xlane.f32.xlu1 %v1377_v25  ;;  %v480_v51 = vpack.c.f32.eXmY %v463_v50, %v465_v39, 61788  ;;  %v1467_v25 = vand.u32 2147483647, %v3324_v9 }
 0x101   :  { %592 = vst.msk [vmem:[%s3204_s2 + $0x20] sm:$0xff] %vm587_vm5, %v545_v3  ;;  %1388 = vmax.xlane.f32.xlu0 %v1376_v12  ;;  %1663 = vrcp.f32 %v545_v3  ;;  %v540_v24 = vpop.xlane.xlu1 %539  ;;  %v1462_v3 = vunpack.c.h.bf16 %v2580_v13  ;;  %v3381_v17 = vunpack.c.h.bf16 %v2034_v40  ;;  %v1464_v49 = vunpack.c.h.bf16 %v2598_v38 }
 0x102   :  { %v538_v2 = vpop.xlane.xlu0 %537  ;;  %v1654_v56 = vpop.eup %1653  ;;  %v484_v48 = vpack.c.f32.eXmY %v467_v8, %v469_v47, 61788  ;;  %v548_v7 = vmul.f32 0.002232143, %v540_v24 }
 0x103   :  { %v547_v60 = vmul.f32 0.002232143, %v538_v2  ;;  %v1656_v57 = vpop.eup %1655  ;;  %v552_v24 = vmul.f32 %v1654_v56, %v3381_v17  ;;  %v3382_v2 = vunpack.c.h.bf16 %v2036_v41  ;;  %v1470_v40 = vand.u32 2147483647, %v1462_v3 }
 0x104   :  { %v488_v12 = vpack.c.b8 %v484_v48, %v480_v51  ;;  %1665 = vrcp.f32 %v548_v7  ;;  %595 = vst.msk [vmem:[%s3204_s2 + $0x38] sm:$0xff] %vm587_vm5, %v548_v7  ;;  %1394 = vmax.xlane.f32.xlu1 %v1379_v21  ;;  %v3385_v41 = vunpack.c.h.bf16 %v2582_v16  ;;  %v1472_v17 = vand.u32 2147483647, %v1464_v49 }
 0x105   :  { %594 = vst.msk [vmem:[%s3204_s2 + $0x30] sm:$0xff] %vm587_vm5, %v547_v60  ;;  %1392 = vmax.xlane.f32.xlu0 %v1378_v5  ;;  %1667 = vrcp.f32 %v547_v60  ;;  %v623_v39 = vpop.xlane.xlu1 %622  ;;  %v550_v51 = vmul.f32 %v1656_v57, %v3382_v2  ;;  %v3383_v5 = vunpack.c.h.bf16 %v2044_v58  ;;  %v1463_v60 = vunpack.c.h.bf16 %v2600_v44 }
 0x106   :  { %v621_v50 = vpop.xlane.xlu0 %620  ;;  %v1658_v47 = vpop.eup %1657  ;;  %491 = vst [vmem:[#allocation5 + $0xa0] sm:$0xff] %v488_v12  ;;  %v637_v48 = vmul.f32 0.002232143, %v623_v39  ;;  %v1469_v58 = vand.u32 2147483647, %v3385_v41 }
 0x107   :  { %v636_v7 = vmul.f32 0.002232143, %v621_v50  ;;  %v1660_v21 = vpop.eup %1659  ;;  %v556_v9 = vmul.f32 %v1658_v47, %v3383_v5  ;;  %v565_v57 = vpack.c.f32.eXmY %v550_v51, %v552_v24, 61788 }
 0x108   :  { %v554_v8 = vmul.f32 %v1660_v21, %v3384_v15  ;;  %1669 = vrcp.f32 %v637_v48  ;;  %684 = vst.msk [vmem:[%s3204_s2 + $0x8] sm:$0xff] %vm682_vm6, %v637_v48  ;;  %1477 = vmax.xlane.f32.xlu1 %v1468_v28  ;;  %v1471_v28 = vand.u32 2147483647, %v1463_v60  ;;  %v3386_v48 = vunpack.c.h.bf16 %v2054_v22 }
 0x109   :  { %683 = vst.msk [vmem:[%s3204_s2] sm:$0xff] %vm682_vm6, %v636_v7  ;;  %1475 = vmax.xlane.f32.xlu0 %v1467_v25  ;;  %1671 = vrcp.f32 %v636_v7  ;;  %v627_v59 = vpop.xlane.xlu1 %626  ;;  %v3387_v21 = vunpack.c.h.bf16 %v2056_v23 }
 0x10a   :  { %v625_v15 = vpop.xlane.xlu0 %624  ;;  %v1662_v56 = vpop.eup %1661  ;;  %v569_v12 = vpack.c.f32.eXmY %v554_v8, %v556_v9, 61788  ;;  %v639_v39 = vmul.f32 0.002232143, %v627_v59  ;;  %v1466_v9 = vunpack.c.h.bf16 %v2624_v45  ;;  %v1465_v8 = vunpack.c.h.bf16 %v2626_v14 }
 0x10b   :  { %v638_v50 = vmul.f32 0.002232143, %v625_v15  ;;  %v1664_v47 = vpop.eup %1663  ;;  %v560_v7 = vmul.f32 %v1662_v56, %v3386_v48  ;;  %v3390_v48 = vunpack.c.l.bf16 %v2098_v62 }
 0x10c   :  { %v573_v25 = vpack.c.b8 %v569_v12, %v565_v57  ;;  %1673 = vrcp.f32 %v639_v39  ;;  %686 = vst.msk [vmem:[%s3204_s2 + $0x18] sm:$0xff] %vm682_vm6, %v639_v39  ;;  %1481 = vmax.xlane.f32.xlu1 %v1470_v40  ;;  %v558_v5 = vmul.f32 %v1664_v47, %v3387_v21  ;;  %v3388_v40 = vunpack.c.h.bf16 %v2064_v53 }
 0x10d   :  { %685 = vst.msk [vmem:[%s3204_s2 + $0x10] sm:$0xff] %vm682_vm6, %v638_v50  ;;  %1479 = vmax.xlane.f32.xlu0 %v1469_v58  ;;  %1675 = vrcp.f32 %v638_v50  ;;  %v631_v24 = vpop.xlane.xlu1 %630  ;;  %v3389_v57 = vunpack.c.h.bf16 %v2066_v52  ;;  %v1474_v53 = vand.u32 2147483647, %v1466_v9  ;;  %v1473_v52 = vand.u32 2147483647, %v1465_v8 }
 0x10e   :  { %v629_v2 = vpop.xlane.xlu0 %628  ;;  %v1666_v51 = vpop.eup %1665  ;;  %585 = vst [vmem:[#allocation5 + $0x28] sm:$0xff] %v573_v25  ;;  %v641_v41 = vmul.f32 0.002232143, %v631_v24  ;;  %v575_v39 = vpack.c.f32.eXmY %v558_v5, %v560_v7, 61788  ;;  %v3391_v21 = vunpack.c.l.bf16 %v2100_v27 }
 0x10f   :  { %v640_v59 = vmul.f32 0.002232143, %v629_v2  ;;  %v1668_v15 = vpop.eup %1667  ;;  %v564_v58 = vmul.f32 %v1666_v51, %v3388_v40  ;;  %v3392_v40 = vunpack.c.l.bf16 %v2108_v63 }
 0x110   :  { %v562_v12 = vmul.f32 %v1668_v15, %v3389_v57  ;;  %1677 = vrcp.f32 %v641_v41  ;;  %688 = vst.msk [vmem:[%s3204_s2 + $0x28] sm:$0xff] %vm682_vm6, %v641_v41  ;;  %1485 = vmax.xlane.f32.xlu1 %v1472_v17  ;;  %v3393_v57 = vunpack.c.l.bf16 %v2110_v26 }
 0x111   :  { %687 = vst.msk [vmem:[%s3204_s2 + $0x20] sm:$0xff] %vm682_vm6, %v640_v59  ;;  %1483 = vmax.xlane.f32.xlu0 %v1471_v28  ;;  %1679 = vrcp.f32 %v640_v59  ;;  %v635_v22 = vpop.xlane.xlu1 %634 }
 0x112   :  { %v633_v23 = vpop.xlane.xlu0 %632  ;;  %v1670_v56 = vpop.eup %1669  ;;  %v579_v50 = vpack.c.f32.eXmY %v562_v12, %v564_v58, 61788  ;;  %v643_v47 = vmul.f32 0.002232143, %v635_v22 }
 0x113   :  { %v642_v25 = vmul.f32 0.002232143, %v633_v23  ;;  %v1672_v24 = vpop.eup %1671  ;;  %v647_v7 = vmul.f32 %v1670_v56, %v3390_v48  ;;  %v3395_v48 = vunpack.c.l.bf16 %v2120_v18 }
 0x114   :  { %v583_v2 = vpack.c.b8 %v579_v50, %v575_v39  ;;  %1681 = vrcp.f32 %v643_v47  ;;  %690 = vst.msk [vmem:[%s3204_s2 + $0x38] sm:$0xff] %vm682_vm6, %v643_v47  ;;  %1489 = vmax.xlane.f32.xlu1 %v1474_v53  ;;  %v645_v5 = vmul.f32 %v1672_v24, %v3391_v21 }
 0x115   :  { %689 = vst.msk [vmem:[%s3204_s2 + $0x30] sm:$0xff] %vm682_vm6, %v642_v25  ;;  %1487 = vmax.xlane.f32.xlu0 %v1473_v52  ;;  %1683 = vrcp.f32 %v642_v25  ;;  %v718_v17 = vpop.xlane.xlu1 %717 }
 0x116   :  { %v716_v28 = vpop.xlane.xlu0 %715  ;;  %v1674_v51 = vpop.eup %1673  ;;  %586 = vst [vmem:[#allocation5 + $0xa8] sm:$0xff] %v583_v2  ;;  %v732_v41 = vmul.f32 0.002232143, %v718_v17  ;;  %v660_v23 = vpack.c.f32.eXmY %v645_v5, %v647_v7, 61788 }
 0x117   :  { %v731_v59 = vmul.f32 0.002232143, %v716_v28  ;;  %v1676_v15 = vpop.eup %1675  ;;  %v651_v58 = vmul.f32 %v1674_v51, %v3392_v40  ;;  %v3394_v28 = vunpack.c.l.bf16 %v2118_v19  ;;  %v3397_v40 = vunpack.c.l.bf16 %v2130_v10 }
 0x118   :  { %v649_v12 = vmul.f32 %v1676_v15, %v3393_v57  ;;  %1685 = vrcp.f32 %v732_v41  ;;  %779 = vst.msk [vmem:[%s3204_s2 + $0x8] sm:$0xff] %vm777_vm7, %v732_v41 }
 0x119   :  { %778 = vst.msk [vmem:[%s3204_s2] sm:$0xff] %vm777_vm7, %v731_v59  ;;  %1687 = vrcp.f32 %v731_v59  ;;  %v722_v53 = vpop.xlane.xlu1 %721  ;;  %v3396_v59 = vunpack.c.l.bf16 %v2128_v11 }
 0x11a   :  { %v720_v52 = vpop.xlane.xlu0 %719  ;;  %v1678_v22 = vpop.eup %1677  ;;  %v664_v56 = vpack.c.f32.eXmY %v649_v12, %v651_v58, 61788  ;;  %v734_v39 = vmul.f32 0.002232143, %v722_v53 }
 0x11b   :  { %v733_v50 = vmul.f32 0.002232143, %v720_v52  ;;  %v1680_v47 = vpop.eup %1679  ;;  %v655_v51 = vmul.f32 %v1678_v22, %v3394_v28  ;;  %v3399_v28 = vunpack.c.h.bf16 %v2100_v27 }
 0x11c   :  { %v668_v25 = vpack.c.b8 %v664_v56, %v660_v23  ;;  %1689 = vrcp.f32 %v734_v39  ;;  %781 = vst.msk [vmem:[%s3204_s2 + $0x18] sm:$0xff] %vm777_vm7, %v734_v39  ;;  %v653_v7 = vmul.f32 %v1680_v47, %v3395_v48 }
 0x11d   :  { %780 = vst.msk [vmem:[%s3204_s2 + $0x10] sm:$0xff] %vm777_vm7, %v733_v50  ;;  %1691 = vrcp.f32 %v733_v50  ;;  %v726_v24 = vpop.xlane.xlu1 %725 }
 0x11e   :  { %v724_v2 = vpop.xlane.xlu0 %723  ;;  %v1682_v17 = vpop.eup %1681  ;;  %680 = vst [vmem:[#allocation5 + $0x30] sm:$0xff] %v668_v25  ;;  %v736_v21 = vmul.f32 0.002232143, %v726_v24  ;;  %v670_v52 = vpack.c.f32.eXmY %v653_v7, %v655_v51, 61788 }
 0x11f   :  { %v735_v5 = vmul.f32 0.002232143, %v724_v2  ;;  %v1684_v41 = vpop.eup %1683  ;;  %v659_v15 = vmul.f32 %v1682_v17, %v3396_v59  ;;  %v3398_v2 = vunpack.c.h.bf16 %v2098_v62  ;;  %v3401_v59 = vunpack.c.h.bf16 %v2110_v26 }
 0x120   :  { %v657_v58 = vmul.f32 %v1684_v41, %v3397_v40  ;;  %1693 = vrcp.f32 %v736_v21  ;;  %783 = vst.msk [vmem:[%s3204_s2 + $0x28] sm:$0xff] %vm777_vm7, %v736_v21 }
 0x121   :  { %782 = vst.msk [vmem:[%s3204_s2 + $0x20] sm:$0xff] %vm777_vm7, %v735_v5  ;;  %1695 = vrcp.f32 %v735_v5  ;;  %v730_v57 = vpop.xlane.xlu1 %729  ;;  %v3400_v5 = vunpack.c.h.bf16 %v2108_v63 }
 0x122   :  { %v728_v12 = vpop.xlane.xlu0 %727  ;;  %v1686_v53 = vpop.eup %1685  ;;  %v674_v22 = vpack.c.f32.eXmY %v657_v58, %v659_v15, 61788  ;;  %v738_v23 = vmul.f32 0.002232143, %v730_v57 }
 0x123   :  { %v737_v56 = vmul.f32 0.002232143, %v728_v12  ;;  %v1688_v39 = vpop.eup %1687  ;;  %v742_v17 = vmul.f32 %v1686_v53, %v3398_v2 }
 0x124   :  { %v678_v50 = vpack.c.b8 %v674_v22, %v670_v52  ;;  %1697 = vrcp.f32 %v738_v23  ;;  %785 = vst.msk [vmem:[%s3204_s2 + $0x38] sm:$0xff] %vm777_vm7, %v738_v23  ;;  %v740_v51 = vmul.f32 %v1688_v39, %v3399_v28 }
 0x125   :  { %784 = vst.msk [vmem:[%s3204_s2 + $0x30] sm:$0xff] %vm777_vm7, %v737_v56  ;;  %1699 = vrcp.f32 %v737_v56  ;;  %v813_v47 = vpop.xlane.xlu1 %812  ;;  %v3402_v56 = vunpack.c.h.bf16 %v2118_v19 }
 0x126   :  { %v811_v25 = vpop.xlane.xlu0 %810  ;;  %v1690_v24 = vpop.eup %1689  ;;  %681 = vst [vmem:[#allocation5 + $0xb0] sm:$0xff] %v678_v50  ;;  %v827_v48 = vmul.f32 0.002232143, %v813_v47  ;;  %v755_v63 = vpack.c.f32.eXmY %v740_v51, %v742_v17, 61788  ;;  %v3403_v50 = vunpack.c.h.bf16 %v2120_v18  ;;  %v3404_v17 = vunpack.c.h.bf16 %v2128_v11 }
 0x127   :  { %v826_v7 = vmul.f32 0.002232143, %v811_v25  ;;  %v1692_v21 = vpop.eup %1691  ;;  %v746_v41 = vmul.f32 %v1690_v24, %v3400_v5  ;;  %v3405_v51 = vunpack.c.h.bf16 %v2130_v10 }
 0x128   :  { %v744_v15 = vmul.f32 %v1692_v21, %v3401_v59  ;;  %1701 = vrcp.f32 %v827_v48  ;;  %874 = vst.msk [vmem:[%s3204_s2 + $0x8] sm:$0xff] %vm872_vm8, %v827_v48 }
 0x129   :  { %873 = vst.msk [vmem:[%s3204_s2] sm:$0xff] %vm872_vm8, %v826_v7  ;;  %1703 = vrcp.f32 %v826_v7  ;;  %v817_v27 = vpop.xlane.xlu1 %816 }
 0x12a   :  { %v815_v62 = vpop.xlane.xlu0 %814  ;;  %v1694_v40 = vpop.eup %1693  ;;  %v759_v58 = vpack.c.f32.eXmY %v744_v15, %v746_v41, 61788  ;;  %v829_v57 = vmul.f32 0.002232143, %v817_v27 }
 0x12b   :  { %v828_v26 = vmul.f32 0.002232143, %v815_v62  ;;  %v1696_v12 = vpop.eup %1695  ;;  %v750_v39 = vmul.f32 %v1694_v40, %v3402_v56  ;;  %v3406_v40 = vunpack.c.l.bf16 %v2162_v31  ;;  %v3410_v56 = vld [vmem:[#allocation9_spill] sm:$0xff] }
 0x12c   :  { %v763_v53 = vpack.c.b8 %v759_v58, %v755_v63  ;;  %1705 = vrcp.f32 %v829_v57  ;;  %876 = vst.msk [vmem:[%s3204_s2 + $0x18] sm:$0xff] %vm872_vm8, %v829_v57  ;;  %v748_v47 = vmul.f32 %v1696_v12, %v3403_v50  ;;  %v3407_v58 = vunpack.c.l.bf16 %v2164_v55 }
 0x12d   :  { %875 = vst.msk [vmem:[%s3204_s2 + $0x10] sm:$0xff] %vm872_vm8, %v828_v26  ;;  %1707 = vrcp.f32 %v828_v26  ;;  %v821_v52 = vpop.xlane.xlu1 %820 }
 0x12e   :  { %v819_v22 = vpop.xlane.xlu0 %818  ;;  %v1698_v23 = vpop.eup %1697  ;;  %775 = vst [vmem:[#allocation5 + $0x38] sm:$0xff] %v763_v53  ;;  %v831_v25 = vmul.f32 0.002232143, %v821_v52  ;;  %v765_v11 = vpack.c.f32.eXmY %v748_v47, %v750_v39, 61788  ;;  %v3408_v52 = vld [vmem:[#allocation8_spill] sm:$0xff]  ;;  %v3411_v39 = vunpack.c.l.bf16 %v3410_v56 }
 0x12f   :  { %v830_v24 = vmul.f32 0.002232143, %v819_v22  ;;  %v1700_v2 = vpop.eup %1699  ;;  %v754_v28 = vmul.f32 %v1698_v23, %v3404_v17  ;;  %v3409_v22 = vunpack.c.l.bf16 %v3408_v52 }
 0x130   :  { %v752_v48 = vmul.f32 %v1700_v2, %v3405_v51  ;;  %1709 = vrcp.f32 %v831_v25  ;;  %878 = vst.msk [vmem:[%s3204_s2 + $0x28] sm:$0xff] %vm872_vm8, %v831_v25 }
 0x131   :  { %877 = vst.msk [vmem:[%s3204_s2 + $0x20] sm:$0xff] %vm872_vm8, %v830_v24  ;;  %1711 = vrcp.f32 %v830_v24  ;;  %v825_v18 = vpop.xlane.xlu1 %824 }
 0x132   :  { %v823_v19 = vpop.xlane.xlu0 %822  ;;  %v1702_v7 = vpop.eup %1701  ;;  %v769_v21 = vpack.c.f32.eXmY %v752_v48, %v754_v28, 61788  ;;  %v833_v5 = vmul.f32 0.002232143, %v825_v18 }
 0x133   :  { %v832_v10 = vmul.f32 0.002232143, %v823_v19  ;;  %v1704_v41 = vpop.eup %1703  ;;  %v837_v63 = vmul.f32 %v1702_v7, %v3406_v40 }
 0x134   :  { %v773_v59 = vpack.c.b8 %v769_v21, %v765_v11  ;;  %1713 = vrcp.f32 %v833_v5  ;;  %880 = vst.msk [vmem:[%s3204_s2 + $0x38] sm:$0xff] %vm872_vm8, %v833_v5  ;;  %v835_v57 = vmul.f32 %v1704_v41, %v3407_v58  ;;  %v3412_v21 = vld [vmem:[#allocation10_spill] sm:$0xff]  ;;  %v3414_v41 = vld [vmem:[#allocation11_spill] sm:$0xff] }
 0x135   :  { %879 = vst.msk [vmem:[%s3204_s2 + $0x30] sm:$0xff] %vm872_vm8, %v832_v10  ;;  %1715 = vrcp.f32 %v832_v10  ;;  %v908_v15 = vpop.xlane.xlu1 %907  ;;  %v3413_v5 = vunpack.c.l.bf16 %v3412_v21 }
 0x136   :  { %v906_v27 = vpop.xlane.xlu0 %905  ;;  %v1706_v62 = vpop.eup %1705  ;;  %776 = vst [vmem:[#allocation5 + $0xb8] sm:$0xff] %v773_v59  ;;  %v922_v26 = vmul.f32 0.002232143, %v908_v15  ;;  %v850_v2 = vpack.c.f32.eXmY %v835_v57, %v837_v63, 61788  ;;  %v3415_v59 = vunpack.c.l.bf16 %v3414_v41  ;;  %v3416_v63 = vld [vmem:[#allocation12_spill] sm:$0xff] }
 0x137   :  { %v921_v12 = vmul.f32 0.002232143, %v906_v27  ;;  %v1708_v53 = vpop.eup %1707  ;;  %v841_v23 = vmul.f32 %v1706_v62, %v3409_v22  ;;  %v3417_v58 = vunpack.c.l.bf16 %v3416_v63 }
 0x138   :  { %v839_v50 = vmul.f32 %v1708_v53, %v3411_v39  ;;  %1717 = vrcp.f32 %v922_v26  ;;  %969 = vst.msk [vmem:[%s3204_s2 + $0x8] sm:$0xff] %vm967_vm9, %v922_v26  ;;  %v3418_v26 = vld [vmem:[#allocation13_spill] sm:$0xff] }
 0x139   :  { %968 = vst.msk [vmem:[%s3204_s2] sm:$0xff] %vm967_vm9, %v921_v12  ;;  %1719 = vrcp.f32 %v921_v12  ;;  %v912_v47 = vpop.xlane.xlu1 %911  ;;  %v3419_v12 = vunpack.c.l.bf16 %v3418_v26 }
 0x13a   :  { %v910_v25 = vpop.xlane.xlu0 %909  ;;  %v1710_v24 = vpop.eup %1709  ;;  %v854_v17 = vpack.c.f32.eXmY %v839_v50, %v841_v23, 61788  ;;  %v924_v28 = vmul.f32 0.002232143, %v912_v47 }
 0x13b   :  { %v923_v51 = vmul.f32 0.002232143, %v910_v25  ;;  %v1712_v48 = vpop.eup %1711  ;;  %v845_v10 = vmul.f32 %v1710_v24, %v3413_v5 }
 0x13c   :  { %v858_v18 = vpack.c.b8 %v854_v17, %v850_v2  ;;  %1721 = vrcp.f32 %v924_v28  ;;  %971 = vst.msk [vmem:[%s3204_s2 + $0x18] sm:$0xff] %vm967_vm9, %v924_v28  ;;  %v843_v15 = vmul.f32 %v1712_v48, %v3415_v59 }
 0x13d   :  { %970 = vst.msk [vmem:[%s3204_s2 + $0x10] sm:$0xff] %vm967_vm9, %v923_v51  ;;  %1723 = vrcp.f32 %v923_v51  ;;  %v916_v19 = vpop.xlane.xlu1 %915 }
 0x13e   :  { %v914_v7 = vpop.xlane.xlu0 %913  ;;  %v1714_v11 = vpop.eup %1713  ;;  %870 = vst [vmem:[#allocation5 + $0x40] sm:$0xff] %v858_v18  ;;  %v926_v27 = vmul.f32 0.002232143, %v916_v19  ;;  %v860_v50 = vpack.c.f32.eXmY %v843_v15, %v845_v10, 61788  ;;  %v3420_v18 = vunpack.c.h.bf16 %v2162_v31  ;;  %v3422_v15 = vunpack.c.h.bf16 %v3408_v52 }
 0x13f   :  { %v925_v62 = vmul.f32 0.002232143, %v914_v7  ;;  %v1716_v40 = vpop.eup %1715  ;;  %v849_v57 = vmul.f32 %v1714_v11, %v3417_v58  ;;  %v3421_v7 = vunpack.c.h.bf16 %v2164_v55 }
 0x140   :  { %v847_v53 = vmul.f32 %v1716_v40, %v3419_v12  ;;  %1725 = vrcp.f32 %v926_v27  ;;  %973 = vst.msk [vmem:[%s3204_s2 + $0x28] sm:$0xff] %vm967_vm9, %v926_v27 }
 0x141   :  { %972 = vst.msk [vmem:[%s3204_s2 + $0x20] sm:$0xff] %vm967_vm9, %v925_v62  ;;  %1727 = vrcp.f32 %v925_v62  ;;  %v920_v22 = vpop.xlane.xlu1 %919  ;;  %v3423_v62 = vunpack.c.h.bf16 %v3410_v56 }
 0x142   :  { %v918_v23 = vpop.xlane.xlu0 %917  ;;  %v1718_v39 = vpop.eup %1717  ;;  %v864_v47 = vpack.c.f32.eXmY %v847_v53, %v849_v57, 61788  ;;  %v928_v25 = vmul.f32 0.002232143, %v920_v22 }
 0x143   :  { %v927_v24 = vmul.f32 0.002232143, %v918_v23  ;;  %v1720_v2 = vpop.eup %1719  ;;  %v932_v19 = vmul.f32 %v1718_v39, %v3420_v18 }
 0x144   :  { %v868_v17 = vpack.c.b8 %v864_v47, %v860_v50  ;;  %1729 = vrcp.f32 %v928_v25  ;;  %975 = vst.msk [vmem:[%s3204_s2 + $0x38] sm:$0xff] %vm967_vm9, %v928_v25  ;;  %v930_v11 = vmul.f32 %v1720_v2, %v3421_v7  ;;  %v3424_v47 = vunpack.c.h.bf16 %v3412_v21 }
 0x145   :  { %974 = vst.msk [vmem:[%s3204_s2 + $0x30] sm:$0xff] %vm967_vm9, %v927_v24  ;;  %1731 = vrcp.f32 %v927_v24  ;;  %v1003_v28 = vpop.xlane.xlu1 %1002  ;;  %v3425_v24 = vunpack.c.h.bf16 %v3414_v41 }
 0x146   :  { %v1001_v51 = vpop.xlane.xlu0 %1000  ;;  %v1722_v48 = vpop.eup %1721  ;;  %871 = vst [vmem:[#allocation5 + $0xc0] sm:$0xff] %v868_v17  ;;  %v1017_v5 = vmul.f32 0.002232143, %v1003_v28  ;;  %v945_v52 = vpack.c.f32.eXmY %v930_v11, %v932_v19, 61788  ;;  %v3427_v19 = vunpack.c.h.bf16 %v3418_v26 }
 0x147   :  { %v1016_v10 = vmul.f32 0.002232143, %v1001_v51  ;;  %v1724_v59 = vpop.eup %1723  ;;  %v936_v27 = vmul.f32 %v1722_v48, %v3422_v15  ;;  %v3426_v48 = vunpack.c.h.bf16 %v3416_v63 }
 0x148   :  { %v934_v40 = vmul.f32 %v1724_v59, %v3423_v62  ;;  %1733 = vrcp.f32 %v1017_v5  ;;  %1064 = vst.msk [vmem:[%s3204_s2 + $0x8] sm:$0xff] %vm1062_vm10, %v1017_v5 }
 0x149   :  { %1063 = vst.msk [vmem:[%s3204_s2] sm:$0xff] %vm1062_vm10, %v1016_v10  ;;  %1735 = vrcp.f32 %v1016_v10  ;;  %v1007_v55 = vpop.xlane.xlu1 %1006 }
 0x14a   :  { %v1005_v31 = vpop.xlane.xlu0 %1004  ;;  %v1726_v58 = vpop.eup %1725  ;;  %v949_v57 = vpack.c.f32.eXmY %v934_v40, %v936_v27, 61788  ;;  %v1019_v12 = vmul.f32 0.002232143, %v1007_v55  ;;  %v3428_v55 = vunpack.c.l.bf16 %v2242_v35 }
 0x14b   :  { %v1018_v56 = vmul.f32 0.002232143, %v1005_v31  ;;  %v1728_v53 = vpop.eup %1727  ;;  %v940_v25 = vmul.f32 %v1726_v58, %v3424_v47  ;;  %v3429_v58 = vunpack.c.l.bf16 %v2244_v46 }
 0x14c   :  { %v953_v22 = vpack.c.b8 %v949_v57, %v945_v52  ;;  %1737 = vrcp.f32 %v1019_v12  ;;  %1066 = vst.msk [vmem:[%s3204_s2 + $0x18] sm:$0xff] %vm1062_vm10, %v1019_v12  ;;  %v938_v2 = vmul.f32 %v1728_v53, %v3425_v24  ;;  %v3430_v53 = vunpack.c.l.bf16 %v2260_v29 }
 0x14d   :  { %1065 = vst.msk [vmem:[%s3204_s2 + $0x10] sm:$0xff] %vm1062_vm10, %v1018_v56  ;;  %1739 = vrcp.f32 %v1018_v56  ;;  %v1011_v23 = vpop.xlane.xlu1 %1010 }
 0x14e   :  { %v1009_v39 = vpop.xlane.xlu0 %1008  ;;  %v1730_v50 = vpop.eup %1729  ;;  %965 = vst [vmem:[#allocation5 + $0x48] sm:$0xff] %v953_v22  ;;  %v1021_v17 = vmul.f32 0.002232143, %v1011_v23  ;;  %v955_v63 = vpack.c.f32.eXmY %v938_v2, %v940_v25, 61788  ;;  %v3431_v23 = vunpack.c.l.bf16 %v2262_v33 }
 0x14f   :  { %v1020_v28 = vmul.f32 0.002232143, %v1009_v39  ;;  %v1732_v51 = vpop.eup %1731  ;;  %v944_v18 = vmul.f32 %v1730_v50, %v3426_v48 }
 0x150   :  { %v942_v7 = vmul.f32 %v1732_v51, %v3427_v19  ;;  %1741 = vrcp.f32 %v1021_v17  ;;  %1068 = vst.msk [vmem:[%s3204_s2 + $0x28] sm:$0xff] %vm1062_vm10, %v1021_v17 }
 0x151   :  { %1067 = vst.msk [vmem:[%s3204_s2 + $0x20] sm:$0xff] %vm1062_vm10, %v1020_v28  ;;  %1743 = vrcp.f32 %v1020_v28  ;;  %v1015_v21 = vpop.xlane.xlu1 %1014 }
 0x152   :  { %v1013_v41 = vpop.xlane.xlu0 %1012  ;;  %v1734_v11 = vpop.eup %1733  ;;  %v959_v5 = vpack.c.f32.eXmY %v942_v7, %v944_v18, 61788  ;;  %v1023_v10 = vmul.f32 0.002232143, %v1015_v21  ;;  %v3432_v21 = vunpack.c.l.bf16 %v2265_v32 }
 0x153   :  { %v1022_v26 = vmul.f32 0.002232143, %v1013_v41  ;;  %v1736_v59 = vpop.eup %1735  ;;  %v1027_v31 = vmul.f32 %v1734_v11, %v3428_v55  ;;  %v3433_v11 = vunpack.c.l.bf16 %v2280_v61 }
 0x154   :  { %v963_v15 = vpack.c.b8 %v959_v5, %v955_v63  ;;  %1745 = vrcp.f32 %v1023_v10  ;;  %1070 = vst.msk [vmem:[%s3204_s2 + $0x38] sm:$0xff] %vm1062_vm10, %v1023_v10  ;;  %v1025_v52 = vmul.f32 %v1736_v59, %v3429_v58  ;;  %v3434_v59 = vunpack.c.l.bf16 %v2304_v42 }
 0x155   :  { %1069 = vst.msk [vmem:[%s3204_s2 + $0x30] sm:$0xff] %vm1062_vm10, %v1022_v26  ;;  %1747 = vrcp.f32 %v1022_v26  ;;  %v1098_v27 = vpop.xlane.xlu1 %1097 }
 0x156   :  { %v1096_v62 = vpop.xlane.xlu0 %1095  ;;  %v1738_v40 = vpop.eup %1737  ;;  %966 = vst [vmem:[#allocation5 + $0xc8] sm:$0xff] %v963_v15  ;;  %v1112_v57 = vmul.f32 0.002232143, %v1098_v27  ;;  %v1040_v24 = vpack.c.f32.eXmY %v1025_v52, %v1027_v31, 61788  ;;  %v3435_v27 = vunpack.c.l.bf16 %v2306_v37 }
 0x157   :  { %v1111_v12 = vmul.f32 0.002232143, %v1096_v62  ;;  %v1740_v56 = vpop.eup %1739  ;;  %v1031_v22 = vmul.f32 %v1738_v40, %v3430_v53 }
 0x158   :  { %v1029_v39 = vmul.f32 %v1740_v56, %v3431_v23  ;;  %1749 = vrcp.f32 %v1112_v57  ;;  %1159 = vst.msk [vmem:[%s3204_s2 + $0x8] sm:$0xff] %vm1157_vm11, %v1112_v57 }
 0x159   :  { %1158 = vst.msk [vmem:[%s3204_s2] sm:$0xff] %vm1157_vm11, %v1111_v12  ;;  %1751 = vrcp.f32 %v1111_v12  ;;  %v1102_v50 = vpop.xlane.xlu1 %1101 }
 0x15a   :  { %v1100_v47 = vpop.xlane.xlu0 %1099  ;;  %v1742_v25 = vpop.eup %1741  ;;  %v1044_v2 = vpack.c.f32.eXmY %v1029_v39, %v1031_v22, 61788  ;;  %v1114_v17 = vmul.f32 0.002232143, %v1102_v50  ;;  %v3436_v50 = vunpack.c.h.bf16 %v2242_v35 }
 0x15b   :  { %v1113_v28 = vmul.f32 0.002232143, %v1100_v47  ;;  %v1744_v51 = vpop.eup %1743  ;;  %v1035_v41 = vmul.f32 %v1742_v25, %v3432_v21  ;;  %v3437_v25 = vunpack.c.h.bf16 %v2244_v46 }
 0x15c   :  { %v1048_v48 = vpack.c.b8 %v1044_v2, %v1040_v24  ;;  %1753 = vrcp.f32 %v1114_v17  ;;  %1161 = vst.msk [vmem:[%s3204_s2 + $0x18] sm:$0xff] %vm1157_vm11, %v1114_v17  ;;  %v1033_v63 = vmul.f32 %v1744_v51, %v3433_v11  ;;  %v3438_v51 = vunpack.c.h.bf16 %v2260_v29 }
 0x15d   :  { %1160 = vst.msk [vmem:[%s3204_s2 + $0x10] sm:$0xff] %vm1157_vm11, %v1113_v28  ;;  %1755 = vrcp.f32 %v1113_v28  ;;  %v1106_v18 = vpop.xlane.xlu1 %1105 }
 0x15e   :  { %v1104_v19 = vpop.xlane.xlu0 %1103  ;;  %v1746_v7 = vpop.eup %1745  ;;  %1060 = vst [vmem:[#allocation5 + $0x50] sm:$0xff] %v1048_v48  ;;  %v1116_v5 = vmul.f32 0.002232143, %v1106_v18  ;;  %v1050_v58 = vpack.c.f32.eXmY %v1033_v63, %v1035_v41, 61788  ;;  %v3439_v18 = vunpack.c.h.bf16 %v2262_v33 }
 0x15f   :  { %v1115_v10 = vmul.f32 0.002232143, %v1104_v19  ;;  %v1748_v26 = vpop.eup %1747  ;;  %v1039_v15 = vmul.f32 %v1746_v7, %v3434_v59  ;;  %v3440_v59 = vunpack.c.h.bf16 %v2265_v32 }
 0x160   :  { %v1037_v62 = vmul.f32 %v1748_v26, %v3435_v27  ;;  %1757 = vrcp.f32 %v1116_v5  ;;  %1163 = vst.msk [vmem:[%s3204_s2 + $0x28] sm:$0xff] %vm1157_vm11, %v1116_v5  ;;  %v3441_v27 = vunpack.c.h.bf16 %v2280_v61 }
 0x161   :  { %1162 = vst.msk [vmem:[%s3204_s2 + $0x20] sm:$0xff] %vm1157_vm11, %v1115_v10  ;;  %1759 = vrcp.f32 %v1115_v10  ;;  %v1110_v40 = vpop.xlane.xlu1 %1109 }
 0x162   :  { %v1108_v55 = vpop.xlane.xlu0 %1107  ;;  %v1750_v31 = vpop.eup %1749  ;;  %v1054_v52 = vpack.c.f32.eXmY %v1037_v62, %v1039_v15, 61788  ;;  %v1118_v57 = vmul.f32 0.002232143, %v1110_v40 }
 0x163   :  { %v1117_v12 = vmul.f32 0.002232143, %v1108_v55  ;;  %v1752_v56 = vpop.eup %1751  ;;  %v1122_v47 = vmul.f32 %v1750_v31, %v3436_v50 }
 0x164   :  { %v1058_v53 = vpack.c.b8 %v1054_v52, %v1050_v58  ;;  %1761 = vrcp.f32 %v1118_v57  ;;  %1165 = vst.msk [vmem:[%s3204_s2 + $0x38] sm:$0xff] %vm1157_vm11, %v1118_v57  ;;  %v1120_v24 = vmul.f32 %v1752_v56, %v3437_v25  ;;  %v3442_v58 = vunpack.c.h.bf16 %v2304_v42 }
 0x165   :  { %1164 = vst.msk [vmem:[%s3204_s2 + $0x30] sm:$0xff] %vm1157_vm11, %v1117_v12  ;;  %1763 = vrcp.f32 %v1117_v12  ;;  %v1193_v22 = vpop.xlane.xlu1 %1192  ;;  %v3443_v57 = vunpack.c.h.bf16 %v2306_v37 }
 0x166   :  { %v1191_v23 = vpop.xlane.xlu0 %1190  ;;  %v1754_v39 = vpop.eup %1753  ;;  %1061 = vst [vmem:[#allocation5 + $0xd0] sm:$0xff] %v1058_v53  ;;  %v1207_v2 = vmul.f32 0.002232143, %v1193_v22  ;;  %v1135_v29 = vpack.c.f32.eXmY %v1120_v24, %v1122_v47, 61788  ;;  %v3444_v24 = vunpack.c.l.bf16 %v2394_v43 }
 0x167   :  { %v1206_v17 = vmul.f32 0.002232143, %v1191_v23  ;;  %v1756_v28 = vpop.eup %1755  ;;  %v1126_v48 = vmul.f32 %v1754_v39, %v3438_v51 }
 0x168   :  { %v1124_v19 = vmul.f32 %v1756_v28, %v3439_v18  ;;  %1765 = vrcp.f32 %v1207_v2  ;;  %1254 = vst.msk [vmem:[%s3204_s2 + $0x8] sm:$0xff] %vm1252_vm12, %v1207_v2 }
 0x169   :  { %1253 = vst.msk [vmem:[%s3204_s2] sm:$0xff] %vm1252_vm12, %v1206_v17  ;;  %1767 = vrcp.f32 %v1206_v17  ;;  %v1197_v35 = vpop.xlane.xlu1 %1196  ;;  %v3445_v17 = vunpack.c.l.bf16 %v2396_v36 }
 0x16a   :  { %v1195_v46 = vpop.xlane.xlu0 %1194  ;;  %v1758_v7 = vpop.eup %1757  ;;  %v1139_v21 = vpack.c.f32.eXmY %v1124_v19, %v1126_v48, 61788  ;;  %v1209_v41 = vmul.f32 0.002232143, %v1197_v35  ;;  %v3446_v19 = vunpack.c.l.bf16 %v2420_v34 }
 0x16b   :  { %v1208_v33 = vmul.f32 0.002232143, %v1195_v46  ;;  %v1760_v11 = vpop.eup %1759  ;;  %v1130_v15 = vmul.f32 %v1758_v7, %v3440_v59  ;;  %v3447_v46 = vunpack.c.l.bf16 %v2422_v4 }
 0x16c   :  { %v1143_v63 = vpack.c.b8 %v1139_v21, %v1135_v29  ;;  %1769 = vrcp.f32 %v1209_v41  ;;  %1256 = vst.msk [vmem:[%s3204_s2 + $0x18] sm:$0xff] %vm1252_vm12, %v1209_v41  ;;  %v1128_v62 = vmul.f32 %v1760_v11, %v3441_v27 }
 0x16d   :  { %1255 = vst.msk [vmem:[%s3204_s2 + $0x10] sm:$0xff] %vm1252_vm12, %v1208_v33  ;;  %1771 = vrcp.f32 %v1208_v33  ;;  %v1201_v5 = vpop.xlane.xlu1 %1200 }
 0x16e   :  { %v1199_v10 = vpop.xlane.xlu0 %1198  ;;  %v1762_v26 = vpop.eup %1761  ;;  %1155 = vst [vmem:[#allocation5 + $0x58] sm:$0xff] %v1143_v63  ;;  %v1211_v40 = vmul.f32 0.002232143, %v1201_v5  ;;  %v1145_v42 = vpack.c.f32.eXmY %v1128_v62, %v1130_v15, 61788  ;;  %v3448_v62 = vunpack.c.l.bf16 %v2438_v1 }
 0x16f   :  { %v1210_v55 = vmul.f32 0.002232143, %v1199_v10  ;;  %v1764_v31 = vpop.eup %1763  ;;  %v1134_v52 = vmul.f32 %v1762_v26, %v3442_v58 }
 0x170   :  { %v1132_v12 = vmul.f32 %v1764_v31, %v3443_v57  ;;  %1773 = vrcp.f32 %v1211_v40  ;;  %1258 = vst.msk [vmem:[%s3204_s2 + $0x28] sm:$0xff] %vm1252_vm12, %v1211_v40 }
 0x171   :  { %1257 = vst.msk [vmem:[%s3204_s2 + $0x20] sm:$0xff] %vm1252_vm12, %v1210_v55  ;;  %1775 = vrcp.f32 %v1210_v55  ;;  %v1205_v61 = vpop.xlane.xlu1 %1204  ;;  %v3449_v55 = vunpack.c.l.bf16 %v2440_v0 }
 0x172   :  { %v1203_v32 = vpop.xlane.xlu0 %1202  ;;  %v1766_v56 = vpop.eup %1765  ;;  %v1149_v53 = vpack.c.f32.eXmY %v1132_v12, %v1134_v52, 61788  ;;  %v1213_v22 = vmul.f32 0.002232143, %v1205_v61  ;;  %v3450_v12 = vunpack.c.l.bf16 %v2464_v6 }
 0x173   :  { %v1212_v37 = vmul.f32 0.002232143, %v1203_v32  ;;  %v1768_v23 = vpop.eup %1767  ;;  %v1217_v2 = vmul.f32 %v1766_v56, %v3444_v24  ;;  %v3451_v32 = vunpack.c.l.bf16 %v2466_v30 }
 0x174   :  { %v1153_v39 = vpack.c.b8 %v1149_v53, %v1145_v42  ;;  %1777 = vrcp.f32 %v1213_v22  ;;  %1260 = vst.msk [vmem:[%s3204_s2 + $0x38] sm:$0xff] %vm1252_vm12, %v1213_v22  ;;  %v1215_v28 = vmul.f32 %v1768_v23, %v3445_v17 }
 0x175   :  { %1259 = vst.msk [vmem:[%s3204_s2 + $0x30] sm:$0xff] %vm1252_vm12, %v1212_v37  ;;  %1779 = vrcp.f32 %v1212_v37  ;;  %v1288_v50 = vpop.xlane.xlu1 %1287 }
 0x176   :  { %v1286_v47 = vpop.xlane.xlu0 %1285  ;;  %v1770_v25 = vpop.eup %1769  ;;  %1156 = vst [vmem:[#allocation5 + $0xd8] sm:$0xff] %v1153_v39  ;;  %v1302_v51 = vmul.f32 0.002232143, %v1288_v50  ;;  %v1230_v33 = vpack.c.f32.eXmY %v1215_v28, %v1217_v2, 61788  ;;  %v3452_v28 = vunpack.c.h.bf16 %v2394_v43 }
 0x177   :  { %v1301_v48 = vmul.f32 0.002232143, %v1286_v47  ;;  %v1772_v18 = vpop.eup %1771  ;;  %v1221_v35 = vmul.f32 %v1770_v25, %v3446_v19 }
 0x178   :  { %v1219_v7 = vmul.f32 %v1772_v18, %v3447_v46  ;;  %1781 = vrcp.f32 %v1302_v51  ;;  %1349 = vst.msk [vmem:[%s3204_s2 + $0x8] sm:$0xff] %vm1347_vm13, %v1302_v51 }
 0x179   :  { %1348 = vst.msk [vmem:[%s3204_s2] sm:$0xff] %vm1347_vm13, %v1301_v48  ;;  %1783 = vrcp.f32 %v1301_v48  ;;  %v1292_v29 = vpop.xlane.xlu1 %1291  ;;  %v3453_v48 = vunpack.c.h.bf16 %v2396_v36 }
 0x17a   :  { %v1290_v21 = vpop.xlane.xlu0 %1289  ;;  %v1774_v41 = vpop.eup %1773  ;;  %v1234_v11 = vpack.c.f32.eXmY %v1219_v7, %v1221_v35, 61788  ;;  %v1304_v63 = vmul.f32 0.002232143, %v1292_v29  ;;  %v3454_v7 = vunpack.c.h.bf16 %v2420_v34 }
 0x17b   :  { %v1303_v5 = vmul.f32 0.002232143, %v1290_v21  ;;  %v1776_v10 = vpop.eup %1775  ;;  %v1225_v40 = vmul.f32 %v1774_v41, %v3448_v62  ;;  %v3455_v21 = vunpack.c.h.bf16 %v2422_v4 }
 0x17c   :  { %v1238_v26 = vpack.c.b8 %v1234_v11, %v1230_v33  ;;  %1785 = vrcp.f32 %v1304_v63  ;;  %1351 = vst.msk [vmem:[%s3204_s2 + $0x18] sm:$0xff] %vm1347_vm13, %v1304_v63  ;;  %v1223_v31 = vmul.f32 %v1776_v10, %v3449_v55 }
 0x17d   :  { %1350 = vst.msk [vmem:[%s3204_s2 + $0x10] sm:$0xff] %vm1347_vm13, %v1303_v5  ;;  %1787 = vrcp.f32 %v1303_v5  ;;  %v1296_v59 = vpop.xlane.xlu1 %1295 }
 0x17e   :  { %v1294_v15 = vpop.xlane.xlu0 %1293  ;;  %v1778_v27 = vpop.eup %1777  ;;  %1250 = vst [vmem:[#allocation5 + $0x60] sm:$0xff] %v1238_v26  ;;  %v1306_v58 = vmul.f32 0.002232143, %v1296_v59  ;;  %v1240_v37 = vpack.c.f32.eXmY %v1223_v31, %v1225_v40, 61788  ;;  %v3457_v40 = vunpack.c.h.bf16 %v2440_v0 }
 0x17f   :  { %v1305_v52 = vmul.f32 0.002232143, %v1294_v15  ;;  %v1780_v57 = vpop.eup %1779  ;;  %v1229_v61 = vmul.f32 %v1778_v27, %v3450_v12  ;;  %v3456_v27 = vunpack.c.h.bf16 %v2438_v1 }
 0x180   :  { %v1227_v56 = vmul.f32 %v1780_v57, %v3451_v32  ;;  %1789 = vrcp.f32 %v1306_v58  ;;  %1353 = vst.msk [vmem:[%s3204_s2 + $0x28] sm:$0xff] %vm1347_vm13, %v1306_v58  ;;  %v3458_v57 = vunpack.c.h.bf16 %v2464_v6 }
 0x181   :  { %1352 = vst.msk [vmem:[%s3204_s2 + $0x20] sm:$0xff] %vm1347_vm13, %v1305_v52  ;;  %1791 = vrcp.f32 %v1305_v52  ;;  %v1300_v42 = vpop.xlane.xlu1 %1299 }
 0x182   :  { %v1298_v53 = vpop.xlane.xlu0 %1297  ;;  %v1782_v22 = vpop.eup %1781  ;;  %v1244_v23 = vpack.c.f32.eXmY %v1227_v56, %v1229_v61, 61788  ;;  %v1308_v39 = vmul.f32 0.002232143, %v1300_v42  ;;  %v3459_v61 = vunpack.c.h.bf16 %v2466_v30 }
 0x183   :  { %v1307_v50 = vmul.f32 0.002232143, %v1298_v53  ;;  %v1784_v47 = vpop.eup %1783  ;;  %v1312_v51 = vmul.f32 %v1782_v22, %v3452_v28 }
 0x184   :  { %v1248_v25 = vpack.c.b8 %v1244_v23, %v1240_v37  ;;  %1793 = vrcp.f32 %v1308_v39  ;;  %1355 = vst.msk [vmem:[%s3204_s2 + $0x38] sm:$0xff] %vm1347_vm13, %v1308_v39  ;;  %v1310_v18 = vmul.f32 %v1784_v47, %v3453_v48  ;;  %v3460_v47 = vunpack.c.l.bf16 %v2554_v54 }
 0x185   :  { %1354 = vst.msk [vmem:[%s3204_s2 + $0x30] sm:$0xff] %vm1347_vm13, %v1307_v50  ;;  %1795 = vrcp.f32 %v1307_v50  ;;  %v1383_v24 = vpop.xlane.xlu1 %1382  ;;  %v3462_v48 = vunpack.c.l.bf16 %v2580_v13 }
 0x186   :  { %v1381_v2 = vpop.xlane.xlu0 %1380  ;;  %v1786_v17 = vpop.eup %1785  ;;  %1251 = vst [vmem:[#allocation5 + $0xe0] sm:$0xff] %v1248_v25  ;;  %v1397_v19 = vmul.f32 0.002232143, %v1383_v24  ;;  %v1325_v34 = vpack.c.f32.eXmY %v1310_v18, %v1312_v51, 61788  ;;  %v3461_v24 = vunpack.c.l.bf16 %v2556_v20 }
 0x187   :  { %v1396_v35 = vmul.f32 0.002232143, %v1381_v2  ;;  %v1788_v46 = vpop.eup %1787  ;;  %v1316_v29 = vmul.f32 %v1786_v17, %v3454_v7 }
 0x188   :  { %v1314_v41 = vmul.f32 %v1788_v46, %v3455_v21  ;;  %1797 = vrcp.f32 %v1397_v19  ;;  %1444 = vst.msk [vmem:[%s3204_s2 + $0x8] sm:$0xff] %vm1442_vm14, %v1397_v19  ;;  %v3463_v19 = vunpack.c.l.bf16 %v2582_v16 }
 0x189   :  { %1443 = vst.msk [vmem:[%s3204_s2] sm:$0xff] %vm1442_vm14, %v1396_v35  ;;  %1799 = vrcp.f32 %v1396_v35  ;;  %v1387_v43 = vpop.xlane.xlu1 %1386 }
 0x18a   :  { %v1385_v36 = vpop.xlane.xlu0 %1384  ;;  %v1790_v33 = vpop.eup %1789  ;;  %v1329_v11 = vpack.c.f32.eXmY %v1314_v41, %v1316_v29, 61788  ;;  %v1399_v63 = vmul.f32 0.002232143, %v1387_v43 }
 0x18b   :  { %v1398_v4 = vmul.f32 0.002232143, %v1385_v36  ;;  %v1792_v5 = vpop.eup %1791  ;;  %v1320_v62 = vmul.f32 %v1790_v33, %v3456_v27 }
 0x18c   :  { %v1333_v10 = vpack.c.b8 %v1329_v11, %v1325_v34  ;;  %1801 = vrcp.f32 %v1399_v63  ;;  %1446 = vst.msk [vmem:[%s3204_s2 + $0x18] sm:$0xff] %vm1442_vm14, %v1399_v63  ;;  %v1318_v55 = vmul.f32 %v1792_v5, %v3457_v40  ;;  %v3464_v5 = vunpack.c.l.bf16 %v2598_v38 }
 0x18d   :  { %1445 = vst.msk [vmem:[%s3204_s2 + $0x10] sm:$0xff] %vm1442_vm14, %v1398_v4  ;;  %1803 = vrcp.f32 %v1398_v4  ;;  %v1391_v26 = vpop.xlane.xlu1 %1390  ;;  %v3466_v40 = vunpack.c.l.bf16 %v2624_v45 }
 0x18e   :  { %v1389_v59 = vpop.xlane.xlu0 %1388  ;;  %v1794_v15 = vpop.eup %1793  ;;  %1345 = vst [vmem:[#allocation5 + $0x68] sm:$0xff] %v1333_v10  ;;  %v1401_v31 = vmul.f32 0.002232143, %v1391_v26  ;;  %v1335_v6 = vpack.c.f32.eXmY %v1318_v55, %v1320_v62, 61788  ;;  %v3465_v26 = vunpack.c.l.bf16 %v2600_v44 }
 0x18f   :  { %v1400_v58 = vmul.f32 0.002232143, %v1389_v59  ;;  %v1796_v52 = vpop.eup %1795  ;;  %v1324_v12 = vmul.f32 %v1794_v15, %v3458_v57 }
 0x190   :  { %v1322_v32 = vmul.f32 %v1796_v52, %v3459_v61  ;;  %1805 = vrcp.f32 %v1401_v31  ;;  %1448 = vst.msk [vmem:[%s3204_s2 + $0x28] sm:$0xff] %vm1442_vm14, %v1401_v31  ;;  %v3467_v31 = vunpack.c.l.bf16 %v2626_v14 }
 0x191   :  { %1447 = vst.msk [vmem:[%s3204_s2 + $0x20] sm:$0xff] %vm1442_vm14, %v1400_v58  ;;  %1807 = vrcp.f32 %v1400_v58  ;;  %v1395_v1 = vpop.xlane.xlu1 %1394 }
 0x192   :  { %v1393_v0 = vpop.xlane.xlu0 %1392  ;;  %v1798_v56 = vpop.eup %1797  ;;  %v1339_v42 = vpack.c.f32.eXmY %v1322_v32, %v1324_v12, 61788  ;;  %v1403_v53 = vmul.f32 0.002232143, %v1395_v1 }
 0x193   :  { %v1402_v30 = vmul.f32 0.002232143, %v1393_v0  ;;  %v1800_v22 = vpop.eup %1799  ;;  %v1407_v25 = vmul.f32 %v1798_v56, %v3460_v47 }
 0x194   :  { %v1343_v37 = vpack.c.b8 %v1339_v42, %v1335_v6  ;;  %1809 = vrcp.f32 %v1403_v53  ;;  %1450 = vst.msk [vmem:[%s3204_s2 + $0x38] sm:$0xff] %vm1442_vm14, %v1403_v53  ;;  %v1405_v2 = vmul.f32 %v1800_v22, %v3461_v24  ;;  %v3468_v53 = vunpack.c.h.bf16 %v2554_v54 }
 0x195   :  { %1449 = vst.msk [vmem:[%s3204_s2 + $0x30] sm:$0xff] %vm1442_vm14, %v1402_v30  ;;  %1811 = vrcp.f32 %v1402_v30  ;;  %v1478_v23 = vpop.xlane.xlu1 %1477  ;;  %v3469_v22 = vunpack.c.h.bf16 %v2556_v20 }
 0x196   :  { %v1476_v39 = vpop.xlane.xlu0 %1475  ;;  %v1802_v50 = vpop.eup %1801  ;;  %1346 = vst [vmem:[#allocation5 + $0xe8] sm:$0xff] %v1343_v37  ;;  %v1492_v17 = vmul.f32 0.002232143, %v1478_v23  ;;  %v1420_v21 = vpack.c.f32.eXmY %v1405_v2, %v1407_v25, 61788 }
 0x197   :  { %v1491_v28 = vmul.f32 0.002232143, %v1476_v39  ;;  %v1804_v51 = vpop.eup %1803  ;;  %v1411_v18 = vmul.f32 %v1802_v50, %v3462_v48  ;;  %v3470_v50 = vunpack.c.h.bf16 %v2582_v16 }
 0x198   :  { %v1409_v35 = vmul.f32 %v1804_v51, %v3463_v19  ;;  %1813 = vrcp.f32 %v1492_v17  ;;  %1539 = vst.msk [vmem:[%s3204_s2 + $0x8] sm:$0xff] %vm1537_vm15, %v1492_v17 }
 0x199   :  { %1538 = vst.msk [vmem:[%s3204_s2] sm:$0xff] %vm1537_vm15, %v1491_v28  ;;  %1815 = vrcp.f32 %v1491_v28  ;;  %v1482_v46 = vpop.xlane.xlu1 %1481 }
 0x19a   :  { %v1480_v7 = vpop.xlane.xlu0 %1479  ;;  %v1806_v29 = vpop.eup %1805  ;;  %v1424_v41 = vpack.c.f32.eXmY %v1409_v35, %v1411_v18, 61788  ;;  %v1494_v43 = vmul.f32 0.002232143, %v1482_v46 }
 0x19b   :  { %v1493_v36 = vmul.f32 0.002232143, %v1480_v7  ;;  %v1808_v33 = vpop.eup %1807  ;;  %v1415_v10 = vmul.f32 %v1806_v29, %v3464_v5 }
 0x19c   :  { %v1428_v34 = vpack.c.b8 %v1424_v41, %v1420_v21  ;;  %1817 = vrcp.f32 %v1494_v43  ;;  %1541 = vst.msk [vmem:[%s3204_s2 + $0x18] sm:$0xff] %vm1537_vm15, %v1494_v43  ;;  %v1413_v59 = vmul.f32 %v1808_v33, %v3465_v26 }
 0x19d   :  { %1540 = vst.msk [vmem:[%s3204_s2 + $0x10] sm:$0xff] %vm1537_vm15, %v1493_v36  ;;  %1819 = vrcp.f32 %v1493_v36  ;;  %v1486_v11 = vpop.xlane.xlu1 %1485 }
 0x19e   :  { %v1484_v63 = vpop.xlane.xlu0 %1483  ;;  %v1810_v4 = vpop.eup %1809  ;;  %1440 = vst [vmem:[#allocation5 + $0x70] sm:$0xff] %v1428_v34  ;;  %v1496_v15 = vmul.f32 0.002232143, %v1486_v11  ;;  %v1430_v61 = vpack.c.f32.eXmY %v1413_v59, %v1415_v10, 61788 }
 0x19f   :  { %v1495_v27 = vmul.f32 0.002232143, %v1484_v63  ;;  %v1812_v62 = vpop.eup %1811  ;;  %v1419_v55 = vmul.f32 %v1810_v4, %v3466_v40 }
 0x1a0   :  { %v1417_v58 = vmul.f32 %v1812_v62, %v3467_v31  ;;  %1821 = vrcp.f32 %v1496_v15  ;;  %1543 = vst.msk [vmem:[%s3204_s2 + $0x28] sm:$0xff] %vm1537_vm15, %v1496_v15 }
 0x1a1   :  { %1542 = vst.msk [vmem:[%s3204_s2 + $0x20] sm:$0xff] %vm1537_vm15, %v1495_v27  ;;  %1823 = vrcp.f32 %v1495_v27  ;;  %v1490_v52 = vpop.xlane.xlu1 %1489 }
 0x1a2   :  { %v1488_v57 = vpop.xlane.xlu0 %1487  ;;  %v1814_v12 = vpop.eup %1813  ;;  %v1434_v32 = vpack.c.f32.eXmY %v1417_v58, %v1419_v55, 61788  ;;  %v1498_v1 = vmul.f32 0.002232143, %v1490_v52 }
 0x1a3   :  { %v1497_v0 = vmul.f32 0.002232143, %v1488_v57  ;;  %v1816_v56 = vpop.eup %1815  ;;  %v1502_v30 = vmul.f32 %v1814_v12, %v3468_v53 }
 0x1a4   :  { %v1438_v6 = vpack.c.b8 %v1434_v32, %v1430_v61  ;;  %1825 = vrcp.f32 %v1498_v1  ;;  %1545 = vst.msk [vmem:[%s3204_s2 + $0x38] sm:$0xff] %vm1537_vm15, %v1498_v1  ;;  %v1500_v37 = vmul.f32 %v1816_v56, %v3469_v22 }
 0x1a5   :  { %1544 = vst.msk [vmem:[%s3204_s2 + $0x30] sm:$0xff] %vm1537_vm15, %v1497_v0  ;;  %1827 = vrcp.f32 %v1497_v0  ;;  %s1880_s2 = smov [#allocation5]  }
 0x1a6   :  { %v1818_v42 = vpop.eup %1817  ;;  %1441 = vst [vmem:[#allocation5 + $0xf0] sm:$0xff] %v1438_v6  ;;  %v1515_v24 = vpack.c.f32.eXmY %v1500_v37, %v1502_v30, 61788  ;;  %s1551_s18 = sshll.u32 %s1880_s2, 4  ;;  %s1552_s18 = int_to_ptr.vmem [resolvable:$true] %s1551_s18 }
 0x1a7   :  { %v1820_v23 = vpop.eup %1819  ;;  %v1506_v39 = vmul.f32 %v1818_v42, %v1462_v3  ;;  %s1851_s19 = scalar_lea.vmem %s1552_s18, 4096  ;;  %p1856_p9 = scmp.lt.s32.totalorder %s1552_s18, %s1552_s18 }
 0x1a8   :  { %v1504_v47 = vmul.f32 %v1820_v23, %v3470_v50  ;;  %p1852_p8 = scmp.ne.s32.totalorder %s1552_s18, %s1851_s19  ;;  %p1857_p10 = scmp.lt.s32.totalorder %s1851_s19, %s1851_s19 }
 0x1aa   :  { %v1822_v25 = vpop.eup %1821  ;;  %v1519_v2 = vpack.c.f32.eXmY %v1504_v47, %v1506_v39, 61788  ;;  %p1858_p11 = por %p1857_p10, %p1856_p9 }
 0x1ab   :  { %v1824_v17 = vpop.eup %1823  ;;  %v1510_v54 = vmul.f32 %v1822_v25, %v1464_v49 }
 0x1ac   :  { %v1523_v28 = vpack.c.b8 %v1519_v2, %v1515_v24  ;;  %v1508_v20 = vmul.f32 %v1824_v17, %v1463_v60  ;;  %p1859_p12 = pnand %p1858_p11, %p1852_p8 }
 0x1ae   :  { %v1826_v51 = vpop.eup %1825  ;;  %1535 = vst [vmem:[#allocation5 + $0x78] sm:$0xff] %v1523_v28  ;;  %v1525_v3 = vpack.c.f32.eXmY %v1508_v20, %v1510_v54, 61788 }
 0x1af   :  { %v1828_v48 = vpop.eup %1827  ;;  %v1514_v13 = vmul.f32 %v1826_v51, %v1466_v9 }
 0x1b0   :  { %v1512_v16 = vmul.f32 %v1828_v48, %v1465_v8 }
 0x1b2   :  { %v1529_v18 = vpack.c.f32.eXmY %v1512_v16, %v1514_v13, 61788 }
 0x1b4   :  { %v1533_v19 = vpack.c.b8 %v1529_v18, %v1525_v3 }
 0x1b6   :  { %1536 = vst [vmem:[#allocation5 + $0xf8] sm:$0xff] %v1533_v19 }
 0x1b7   :  { %1862 = shalt.err (!%p1859_p12)
}
 0x1b8   :  { %s1863_s22 = scalar_lea.hbm %s3203_s1, 4096 }
 0x1b9   :  { %p1864_p13 = scmp.ne.s32.totalorder %s3203_s1, %s1863_s22  ;;  %p1867_p0 = scmp.lt.u32.totalorder %s1863_s22, %s3203_s1 }
 0x1bb   :  { %p1869_p1 = pnand %p1867_p0, %p1864_p13 }
 0x1bd   :  { %1872 = shalt.err (!%p1869_p1)
}
 0x1be   :  { %s1881_s26 = smov 2048   ;;  %s1882_s27 = smov 128  }
 0x1bf   :  { %1557 = dma.vmem_to_hbm [thread:$0]  %s1552_s18, 4096, %s3203_s1, [#allocation4], %s1881_s26, %s1881_s26, %s1882_s27  }
 0x1c0   :  { %1875 = dma.done.wait [#allocation4], 4096  }
 0x1c1   :  { %1876 = vsyncadd [#allocation4], 4294963200 }
 0x1c2   :  { %1565 = vsyncpa [#allocation3], 1 }
 0x1c3   :  { %1566 = vsyncpa [#allocation4], 1 }

</bundles_post_ra>
